<compile_context>
chip_gen: v7x
topology: tpu7x:2x2x1
jax: 0.10.0
libtpu: 0.0.40
codegen_flags: <defaults>
</compile_context>

<pallas_src>
import functools
import math

import jax
import jax.numpy as jnp
from jax.experimental import pallas as pl
from jax.experimental.pallas import tpu as pltpu


def _layer_norm(x, gamma, beta, eps=1e-5):
    mu = jnp.mean(x, axis=-1, keepdims=True)
    var = jnp.mean((x - mu) ** 2, axis=-1, keepdims=True)
    return (x - mu) * jax.lax.rsqrt(var + eps) * gamma + beta


def encoder_layer_kernel(
    x_ref,
    wqkv_ref, bqkv_ref, wo_ref, bo_ref,
    g1_ref, be1_ref,
    w1_ref, bf1_ref, w2_ref, bf2_ref,
    g2_ref, be2_ref,
    o_ref,
    *, n_heads,
):
    bb, S, D = x_ref.shape
    H = n_heads
    dh = D // H
    scale = 1.0 / math.sqrt(dh)
    cd = x_ref.dtype          # MXU operand dtype (bf16 when bf16 inputs/weights)

    # Flatten the batch tile into rows so every matmul has M = bb*S.
    x = x_ref[...].reshape(bb * S, D)

    # ---- fused QKV projection: one (bb*S, D) x (D, 3D) MXU pass ----
    qkv = jnp.dot(x, wqkv_ref[...], preferred_element_type=jnp.float32)
    qkv = qkv + bqkv_ref[...]

    def split_heads(t):       # (bb*S, D) -> (bb*H, S, dh): heads become a batch dim
        t = t.reshape(bb, S, H, dh)
        t = jnp.transpose(t, (0, 2, 1, 3))
        return t.reshape(bb * H, S, dh)

    q = split_heads(qkv[:, :D] * scale).astype(cd)      # scale folded into q
    k = split_heads(qkv[:, D:2 * D]).astype(cd)
    v = split_heads(qkv[:, 2 * D:]).astype(cd)

    # ---- batched multi-head attention (one dot_general per matmul) ----
    s = jnp.einsum("bqd,bkd->bqk", q, k,
                   preferred_element_type=jnp.float32)   # (bb*H, S, S)
    s = s - jnp.max(s, axis=-1, keepdims=True)
    p = jnp.exp(s)
    # approx=True routes to the EUP (free slot) but adds ~1e-3 relative error;
    # kept exact here so the f32 reference check stays at 1e-4 tolerance.
    p = p * pl.reciprocal(jnp.sum(p, axis=-1, keepdims=True), approx=False)
    ctx = jnp.einsum("bqk,bkd->bqd", p.astype(cd), v,
                     preferred_element_type=jnp.float32)  # (bb*H, S, dh)
    ctx = jnp.transpose(ctx.reshape(bb, H, S, dh), (0, 2, 1, 3)).reshape(bb * S, D)

    attn = jnp.dot(ctx.astype(cd), wo_ref[...],
                   preferred_element_type=jnp.float32) + bo_ref[...]

    # dropout is identity in eval mode
    x1 = _layer_norm(x.astype(jnp.float32) + attn, g1_ref[...], be1_ref[...])

    # ---- feed-forward network ----
    h = jnp.dot(x1.astype(w1_ref.dtype), w1_ref[...],
                preferred_element_type=jnp.float32) + bf1_ref[...]
    h = jnp.maximum(h, 0.0)
    ff = jnp.dot(h.astype(w2_ref.dtype), w2_ref[...],
                 preferred_element_type=jnp.float32) + bf2_ref[...]

    x2 = _layer_norm(x1 + ff, g2_ref[...], be2_ref[...])
    o_ref[...] = x2.reshape(bb, S, D).astype(o_ref.dtype)


def encoder_layer(x, params, n_heads, *, batch_block=None):
    B, S, D = x.shape
    Hf = params["w1"].shape[1]
    assert D % n_heads == 0, "d_model must be divisible by n_heads"
    H = n_heads
    dh = D // H

    if batch_block is None:
        # Largest divisor of B whose activation tile stays comfortably in VMEM
        # (bigger tiles amortize per-grid-step overhead and feed the MXU).
        batch_block = 1
        for cand in range(B, 0, -1):
            if B % cand == 0 and cand * S * D * 4 <= 8 * 1024 * 1024:
                batch_block = cand
                break
    assert B % batch_block == 0
    bb = batch_block

    # Fuse Q/K/V weights and biases in the wrapper (one MXU pass, one DMA slab).
    wqkv = jnp.concatenate([params["wq"], params["wk"], params["wv"]], axis=1)
    bqkv = jnp.concatenate([params["bq"], params["bk"], params["bv"]], axis=1)

    def w_spec(shape):
        nd = len(shape)
        return pl.BlockSpec(shape, lambda b, _nd=nd: (0,) * _nd)

    in_specs = [
        pl.BlockSpec((bb, S, D), lambda b: (b, 0, 0)),   # x
        w_spec((D, 3 * D)), w_spec((1, 3 * D)),          # fused wqkv, bqkv
        w_spec((D, D)), w_spec((1, D)),                  # wo, bo
        w_spec((1, D)), w_spec((1, D)),                  # ln1 gamma, beta
        w_spec((D, Hf)), w_spec((1, Hf)),                # w1, b1
        w_spec((Hf, D)), w_spec((1, D)),                 # w2, b2
        w_spec((1, D)), w_spec((1, D)),                  # ln2 gamma, beta
    ]

    itemsize = jnp.dtype(x.dtype).itemsize
    param_bytes = sum(int(p.size) * jnp.dtype(p.dtype).itemsize
                      for p in params.values())
    flops = (2 * B * S * D * 3 * D            # fused qkv projection
             + 2 * B * H * S * S * dh * 2     # scores + context
             + 2 * B * S * D * D              # output projection
             + 2 * B * S * D * Hf * 2)        # FFN
    cost = pl.CostEstimate(
        flops=flops,
        transcendentals=B * H * S * S,        # softmax exp
        bytes_accessed=2 * B * S * D * itemsize + param_bytes,
    )

    kernel = functools.partial(encoder_layer_kernel, n_heads=n_heads)

    return pl.pallas_call(
        kernel,
        out_shape=jax.ShapeDtypeStruct((B, S, D), x.dtype),
        grid_spec=pltpu.PrefetchScalarGridSpec(
            num_scalar_prefetch=0,
            grid=(B // bb,),
            in_specs=in_specs,
            out_specs=pl.BlockSpec((bb, S, D), lambda b: (b, 0, 0)),
        ),
        compiler_params=pltpu.CompilerParams(
            dimension_semantics=("parallel",)),
        cost_estimate=cost,
    )(
        x, wqkv, bqkv, params["wo"], params["bo"],
        params["g1"], params["be1"],
        params["w1"], params["bf1"], params["w2"], params["bf2"],
        params["g2"], params["be2"],
    )


def encoder_layer_ref(x, p, n_heads):
    """Pure-JAX reference mirroring the PyTorch forward (eval mode)."""
    B, S, D = x.shape
    dh = D // n_heads
    scale = 1.0 / math.sqrt(dh)

    q = x @ p["wq"] + p["bq"]
    k = x @ p["wk"] + p["bk"]
    v = x @ p["wv"] + p["bv"]
    qh = q.reshape(B, S, n_heads, dh).transpose(0, 2, 1, 3)
    kh = k.reshape(B, S, n_heads, dh).transpose(0, 2, 1, 3)
    vh = v.reshape(B, S, n_heads, dh).transpose(0, 2, 1, 3)
    s = jnp.einsum("bhqd,bhkd->bhqk", qh, kh) * scale
    pattn = jax.nn.softmax(s, axis=-1)
    o = jnp.einsum("bhqk,bhkd->bhqd", pattn, vh).transpose(0, 2, 1, 3).reshape(B, S, D)
    attn = o @ p["wo"] + p["bo"]

    x1 = _layer_norm(x + attn, p["g1"], p["be1"])
    ff = jnp.maximum(x1 @ p["w1"] + p["bf1"], 0.0) @ p["w2"] + p["bf2"]
    return _layer_norm(x1 + ff, p["g2"], p["be2"])


if __name__ == "__main__":
    # Small shapes consistent with the module; d_model chosen lane-dense (128).
    B, S = 2, 8                 # batch, sequence length (<= max_len)
    d_model = 128
    attention_d_head = 32
    ffn_d_hidden = 256
    n_heads = d_model // attention_d_head
    dtype = jnp.float32         # pass bf16 params/inputs for the bf16 MXU path

    key = jax.random.PRNGKey(0)
    keys = jax.random.split(key, 12)
    sc = 0.1
    params = {
        "wq": sc * jax.random.normal(keys[0], (d_model, d_model), dtype),
        "wk": sc * jax.random.normal(keys[1], (d_model, d_model), dtype),
        "wv": sc * jax.random.normal(keys[2], (d_model, d_model), dtype),
        "wo": sc * jax.random.normal(keys[3], (d_model, d_model), dtype),
        "bq": sc * jax.random.normal(keys[4], (1, d_model), dtype),
        "bk": sc * jax.random.normal(keys[5], (1, d_model), dtype),
        "bv": sc * jax.random.normal(keys[6], (1, d_model), dtype),
        "bo": sc * jax.random.normal(keys[7], (1, d_model), dtype),
        "g1": jnp.ones((1, d_model), dtype),
        "be1": jnp.zeros((1, d_model), dtype),
        "w1": sc * jax.random.normal(keys[8], (d_model, ffn_d_hidden), dtype),
        "bf1": sc * jax.random.normal(keys[9], (1, ffn_d_hidden), dtype),
        "w2": sc * jax.random.normal(keys[10], (ffn_d_hidden, d_model), dtype),
        "bf2": sc * jax.random.normal(keys[11], (1, d_model), dtype),
        "g2": jnp.ones((1, d_model), dtype),
        "be2": jnp.zeros((1, d_model), dtype),
    }

    x = jax.random.normal(jax.random.PRNGKey(42), (B, S, d_model), dtype)

    out = encoder_layer(x, params, n_heads)
    out = jax.block_until_ready(out)

    ref = encoder_layer_ref(x, params, n_heads)
    assert out.shape == (B, S, d_model)
    assert jnp.allclose(out, ref, atol=1e-4, rtol=1e-4), (
        float(jnp.max(jnp.abs(out - ref))))

    print("KERNEL_OK")
</pallas_src>

<mosaic_0001>
module attributes {stable_mosaic.version = 11 : i64} {
  func.func @encoder_layer_kernel(%arg0: i32, %arg1: memref<2x8x128xf32, #tpu.memory_space<vmem>>, %arg2: memref<128x384xf32, #tpu.memory_space<vmem>>, %arg3: memref<1x384xf32, #tpu.memory_space<vmem>>, %arg4: memref<128x128xf32, #tpu.memory_space<vmem>>, %arg5: memref<1x128xf32, #tpu.memory_space<vmem>>, %arg6: memref<1x128xf32, #tpu.memory_space<vmem>>, %arg7: memref<1x128xf32, #tpu.memory_space<vmem>>, %arg8: memref<128x256xf32, #tpu.memory_space<vmem>>, %arg9: memref<1x256xf32, #tpu.memory_space<vmem>>, %arg10: memref<256x128xf32, #tpu.memory_space<vmem>>, %arg11: memref<1x128xf32, #tpu.memory_space<vmem>>, %arg12: memref<1x128xf32, #tpu.memory_space<vmem>>, %arg13: memref<1x128xf32, #tpu.memory_space<vmem>>, %arg14: memref<2x8x128xf32, #tpu.memory_space<vmem>>) attributes {dimension_semantics = [#tpu.dimension_semantics<parallel>], iteration_bounds = array<i64: 1>, scalar_prefetch = 0 : i64, scratch_operands = 0 : i64, tpu.core_type = #tpu.core_type<tc>, window_params = [{transform_indices = @transform_0, window_bounds = array<i64: 2, 8, 128>}, {pipeline_mode = #tpu.pipeline_mode<synchronous>, transform_indices = @transform_1, window_bounds = array<i64: 128, 384>}, {pipeline_mode = #tpu.pipeline_mode<synchronous>, transform_indices = @transform_2, window_bounds = array<i64: 1, 384>}, {pipeline_mode = #tpu.pipeline_mode<synchronous>, transform_indices = @transform_3, window_bounds = array<i64: 128, 128>}, {pipeline_mode = #tpu.pipeline_mode<synchronous>, transform_indices = @transform_4, window_bounds = array<i64: 1, 128>}, {pipeline_mode = #tpu.pipeline_mode<synchronous>, transform_indices = @transform_5, window_bounds = array<i64: 1, 128>}, {pipeline_mode = #tpu.pipeline_mode<synchronous>, transform_indices = @transform_6, window_bounds = array<i64: 1, 128>}, {pipeline_mode = #tpu.pipeline_mode<synchronous>, transform_indices = @transform_7, window_bounds = array<i64: 128, 256>}, {pipeline_mode = #tpu.pipeline_mode<synchronous>, transform_indices = @transform_8, window_bounds = array<i64: 1, 256>}, {pipeline_mode = #tpu.pipeline_mode<synchronous>, transform_indices = @transform_9, window_bounds = array<i64: 256, 128>}, {pipeline_mode = #tpu.pipeline_mode<synchronous>, transform_indices = @transform_10, window_bounds = array<i64: 1, 128>}, {pipeline_mode = #tpu.pipeline_mode<synchronous>, transform_indices = @transform_11, window_bounds = array<i64: 1, 128>}, {pipeline_mode = #tpu.pipeline_mode<synchronous>, transform_indices = @transform_12, window_bounds = array<i64: 1, 128>}, {transform_indices = @transform_13, window_bounds = array<i64: 2, 8, 128>}]} {
    %c0 = arith.constant 0 : index
    %c0_0 = arith.constant 0 : index
    %c0_1 = arith.constant 0 : index
    %0 = vector.load %arg1[%c0, %c0_0, %c0_1] : memref<2x8x128xf32, #tpu.memory_space<vmem>>, vector<2x8x128xf32>
    %1 = vector.shape_cast %0 : vector<2x8x128xf32> to vector<16x128xf32>
    %c0_2 = arith.constant 0 : index
    %c0_3 = arith.constant 0 : index
    %2 = vector.load %arg2[%c0_2, %c0_3] : memref<128x384xf32, #tpu.memory_space<vmem>>, vector<128x384xf32>
    %cst = arith.constant dense<0.000000e+00> : vector<16x384xf32>
    %3 = tpu.matmul %1, %2, %cst {dimension_numbers = #tpu.dot_dimension_numbers<[1], [0], [0], [1], [0, 0, 1, 1], [], []>} : vector<16x128xf32>, vector<128x384xf32>, vector<16x384xf32> -> vector<16x384xf32>
    %c0_4 = arith.constant 0 : index
    %c0_5 = arith.constant 0 : index
    %4 = vector.load %arg3[%c0_4, %c0_5] : memref<1x384xf32, #tpu.memory_space<vmem>>, vector<1x384xf32>
    %5 = vector.broadcast %4 : vector<1x384xf32> to vector<16x384xf32>
    %6 = arith.addf %3, %5 : vector<16x384xf32>
    %7 = vector.extract_strided_slice %6 {offsets = [0, 0], sizes = [16, 128], strides = [1, 1]} : vector<16x384xf32> to vector<16x128xf32>
    %cst_6 = arith.constant 0.176776692 : f32
    %8 = vector.broadcast %cst_6 : f32 to vector<16x128xf32>
    %9 = arith.mulf %7, %8 : vector<16x128xf32>
    %10 = vector.shape_cast %9 : vector<16x128xf32> to vector<2x8x4x32xf32>
    %11 = tpu.transpose %10, [0, 2, 1, 3] : vector<2x8x4x32xf32> -> vector<2x4x8x32xf32>
    %12 = vector.shape_cast %11 : vector<2x4x8x32xf32> to vector<8x8x32xf32>
    %13 = vector.extract_strided_slice %6 {offsets = [0, 128], sizes = [16, 128], strides = [1, 1]} : vector<16x384xf32> to vector<16x128xf32>
    %14 = vector.shape_cast %13 : vector<16x128xf32> to vector<2x8x4x32xf32>
    %15 = tpu.transpose %14, [0, 2, 1, 3] : vector<2x8x4x32xf32> -> vector<2x4x8x32xf32>
    %16 = vector.shape_cast %15 : vector<2x4x8x32xf32> to vector<8x8x32xf32>
    %17 = vector.extract_strided_slice %6 {offsets = [0, 256], sizes = [16, 128], strides = [1, 1]} : vector<16x384xf32> to vector<16x128xf32>
    %18 = vector.shape_cast %17 : vector<16x128xf32> to vector<2x8x4x32xf32>
    %19 = tpu.transpose %18, [0, 2, 1, 3] : vector<2x8x4x32xf32> -> vector<2x4x8x32xf32>
    %20 = vector.shape_cast %19 : vector<2x4x8x32xf32> to vector<8x8x32xf32>
    "tpu.trace_start"() <{level = 10 : i32, message = "bqd,bkd->bqk"}> : () -> ()
    %cst_7 = arith.constant dense<0.000000e+00> : vector<8x8x8xf32>
    %21 = tpu.matmul %12, %16, %cst_7 {dimension_numbers = #tpu.dot_dimension_numbers<[2], [2], [1], [1], [0, 0, 0, 1, 1, 1], [0], [0]>} : vector<8x8x32xf32>, vector<8x8x32xf32>, vector<8x8x8xf32> -> vector<8x8x8xf32>
    "tpu.trace_stop"() : () -> ()
    %cst_8 = arith.constant dense<0xFF800000> : vector<8x8xf32>
    %22 = vector.multi_reduction <maximumf>, %21, %cst_8 [2] : vector<8x8x8xf32> to vector<8x8xf32>
    %23 = vector.shape_cast %22 : vector<8x8xf32> to vector<8x8x1xf32>
    %24 = vector.broadcast %23 : vector<8x8x1xf32> to vector<8x8x8xf32>
    %25 = arith.subf %21, %24 : vector<8x8x8xf32>
    %26 = math.exp %25 : vector<8x8x8xf32>
    %cst_9 = arith.constant dense<0.000000e+00> : vector<8x8xf32>
    %27 = vector.multi_reduction <add>, %26, %cst_9 [2] : vector<8x8x8xf32> to vector<8x8xf32>
    %28 = vector.shape_cast %27 : vector<8x8xf32> to vector<8x8x1xf32>
    %29 = tpu.reciprocal %28 : vector<8x8x1xf32> -> vector<8x8x1xf32>
    %30 = vector.broadcast %29 : vector<8x8x1xf32> to vector<8x8x8xf32>
    %31 = arith.mulf %26, %30 : vector<8x8x8xf32>
    "tpu.trace_start"() <{level = 10 : i32, message = "bqk,bkd->bqd"}> : () -> ()
    %cst_10 = arith.constant dense<0.000000e+00> : vector<8x8x32xf32>
    %32 = tpu.matmul %31, %20, %cst_10 {dimension_numbers = #tpu.dot_dimension_numbers<[2], [1], [1], [2], [0, 0, 0, 1, 1, 2], [0], [0]>} : vector<8x8x8xf32>, vector<8x8x32xf32>, vector<8x8x32xf32> -> vector<8x8x32xf32>
    "tpu.trace_stop"() : () -> ()
    %33 = vector.shape_cast %32 : vector<8x8x32xf32> to vector<2x4x8x32xf32>
    %34 = tpu.transpose %33, [0, 2, 1, 3] : vector<2x4x8x32xf32> -> vector<2x8x4x32xf32>
    %35 = vector.shape_cast %34 : vector<2x8x4x32xf32> to vector<16x128xf32>
    %c0_11 = arith.constant 0 : index
    %c0_12 = arith.constant 0 : index
    %36 = vector.load %arg4[%c0_11, %c0_12] : memref<128x128xf32, #tpu.memory_space<vmem>>, vector<128x128xf32>
    %cst_13 = arith.constant dense<0.000000e+00> : vector<16x128xf32>
    %37 = tpu.matmul %35, %36, %cst_13 {dimension_numbers = #tpu.dot_dimension_numbers<[1], [0], [0], [1], [0, 0, 1, 1], [], []>} : vector<16x128xf32>, vector<128x128xf32>, vector<16x128xf32> -> vector<16x128xf32>
    %c0_14 = arith.constant 0 : index
    %c0_15 = arith.constant 0 : index
    %38 = vector.load %arg5[%c0_14, %c0_15] : memref<1x128xf32, #tpu.memory_space<vmem>>, vector<1x128xf32>
    %39 = vector.broadcast %38 : vector<1x128xf32> to vector<16x128xf32>
    %40 = arith.addf %37, %39 : vector<16x128xf32>
    %41 = arith.addf %1, %40 : vector<16x128xf32>
    %c0_16 = arith.constant 0 : index
    %c0_17 = arith.constant 0 : index
    %42 = vector.load %arg6[%c0_16, %c0_17] : memref<1x128xf32, #tpu.memory_space<vmem>>, vector<1x128xf32>
    %c0_18 = arith.constant 0 : index
    %c0_19 = arith.constant 0 : index
    %43 = vector.load %arg7[%c0_18, %c0_19] : memref<1x128xf32, #tpu.memory_space<vmem>>, vector<1x128xf32>
    %cst_20 = arith.constant dense<0.000000e+00> : vector<16xf32>
    %44 = vector.multi_reduction <add>, %41, %cst_20 [1] : vector<16x128xf32> to vector<16xf32>
    %45 = vector.shape_cast %44 : vector<16xf32> to vector<16x1xf32>
    %cst_21 = arith.constant 1.280000e+02 : f32
    %46 = vector.broadcast %cst_21 : f32 to vector<16x1xf32>
    %47 = arith.divf %45, %46 : vector<16x1xf32>
    %48 = vector.broadcast %47 : vector<16x1xf32> to vector<16x128xf32>
    %49 = arith.subf %41, %48 : vector<16x128xf32>
    %50 = arith.mulf %49, %49 : vector<16x128xf32>
    %cst_22 = arith.constant dense<0.000000e+00> : vector<16xf32>
    %51 = vector.multi_reduction <add>, %50, %cst_22 [1] : vector<16x128xf32> to vector<16xf32>
    %52 = vector.shape_cast %51 : vector<16xf32> to vector<16x1xf32>
    %cst_23 = arith.constant 1.280000e+02 : f32
    %53 = vector.broadcast %cst_23 : f32 to vector<16x1xf32>
    %54 = arith.divf %52, %53 : vector<16x1xf32>
    %55 = vector.broadcast %47 : vector<16x1xf32> to vector<16x128xf32>
    %56 = arith.subf %41, %55 : vector<16x128xf32>
    %cst_24 = arith.constant 9.99999974E-6 : f32
    %57 = vector.broadcast %cst_24 : f32 to vector<16x1xf32>
    %58 = arith.addf %54, %57 : vector<16x1xf32>
    %59 = math.rsqrt %58 : vector<16x1xf32>
    %60 = vector.broadcast %59 : vector<16x1xf32> to vector<16x128xf32>
    %61 = arith.mulf %56, %60 : vector<16x128xf32>
    %62 = vector.broadcast %42 : vector<1x128xf32> to vector<16x128xf32>
    %63 = arith.mulf %61, %62 : vector<16x128xf32>
    %64 = vector.broadcast %43 : vector<1x128xf32> to vector<16x128xf32>
    %65 = arith.addf %63, %64 : vector<16x128xf32>
    %c0_25 = arith.constant 0 : index
    %c0_26 = arith.constant 0 : index
    %66 = vector.load %arg8[%c0_25, %c0_26] : memref<128x256xf32, #tpu.memory_space<vmem>>, vector<128x256xf32>
    %cst_27 = arith.constant dense<0.000000e+00> : vector<16x256xf32>
    %67 = tpu.matmul %65, %66, %cst_27 {dimension_numbers = #tpu.dot_dimension_numbers<[1], [0], [0], [1], [0, 0, 1, 1], [], []>} : vector<16x128xf32>, vector<128x256xf32>, vector<16x256xf32> -> vector<16x256xf32>
    %c0_28 = arith.constant 0 : index
    %c0_29 = arith.constant 0 : index
    %68 = vector.load %arg9[%c0_28, %c0_29] : memref<1x256xf32, #tpu.memory_space<vmem>>, vector<1x256xf32>
    %69 = vector.broadcast %68 : vector<1x256xf32> to vector<16x256xf32>
    %70 = arith.addf %67, %69 : vector<16x256xf32>
    %cst_30 = arith.constant 0.000000e+00 : f32
    %71 = vector.broadcast %cst_30 : f32 to vector<16x256xf32>
    %72 = arith.maximumf %70, %71 : vector<16x256xf32>
    %c0_31 = arith.constant 0 : index
    %c0_32 = arith.constant 0 : index
    %73 = vector.load %arg10[%c0_31, %c0_32] : memref<256x128xf32, #tpu.memory_space<vmem>>, vector<256x128xf32>
    %cst_33 = arith.constant dense<0.000000e+00> : vector<16x128xf32>
    %74 = tpu.matmul %72, %73, %cst_33 {dimension_numbers = #tpu.dot_dimension_numbers<[1], [0], [0], [1], [0, 0, 1, 1], [], []>} : vector<16x256xf32>, vector<256x128xf32>, vector<16x128xf32> -> vector<16x128xf32>
    %c0_34 = arith.constant 0 : index
    %c0_35 = arith.constant 0 : index
    %75 = vector.load %arg11[%c0_34, %c0_35] : memref<1x128xf32, #tpu.memory_space<vmem>>, vector<1x128xf32>
    %76 = vector.broadcast %75 : vector<1x128xf32> to vector<16x128xf32>
    %77 = arith.addf %74, %76 : vector<16x128xf32>
    %78 = arith.addf %65, %77 : vector<16x128xf32>
    %c0_36 = arith.constant 0 : index
    %c0_37 = arith.constant 0 : index
    %79 = vector.load %arg12[%c0_36, %c0_37] : memref<1x128xf32, #tpu.memory_space<vmem>>, vector<1x128xf32>
    %c0_38 = arith.constant 0 : index
    %c0_39 = arith.constant 0 : index
    %80 = vector.load %arg13[%c0_38, %c0_39] : memref<1x128xf32, #tpu.memory_space<vmem>>, vector<1x128xf32>
    %cst_40 = arith.constant dense<0.000000e+00> : vector<16xf32>
    %81 = vector.multi_reduction <add>, %78, %cst_40 [1] : vector<16x128xf32> to vector<16xf32>
    %82 = vector.shape_cast %81 : vector<16xf32> to vector<16x1xf32>
    %cst_41 = arith.constant 1.280000e+02 : f32
    %83 = vector.broadcast %cst_41 : f32 to vector<16x1xf32>
    %84 = arith.divf %82, %83 : vector<16x1xf32>
    %85 = vector.broadcast %84 : vector<16x1xf32> to vector<16x128xf32>
    %86 = arith.subf %78, %85 : vector<16x128xf32>
    %87 = arith.mulf %86, %86 : vector<16x128xf32>
    %cst_42 = arith.constant dense<0.000000e+00> : vector<16xf32>
    %88 = vector.multi_reduction <add>, %87, %cst_42 [1] : vector<16x128xf32> to vector<16xf32>
    %89 = vector.shape_cast %88 : vector<16xf32> to vector<16x1xf32>
    %cst_43 = arith.constant 1.280000e+02 : f32
    %90 = vector.broadcast %cst_43 : f32 to vector<16x1xf32>
    %91 = arith.divf %89, %90 : vector<16x1xf32>
    %92 = vector.broadcast %84 : vector<16x1xf32> to vector<16x128xf32>
    %93 = arith.subf %78, %92 : vector<16x128xf32>
    %cst_44 = arith.constant 9.99999974E-6 : f32
    %94 = vector.broadcast %cst_44 : f32 to vector<16x1xf32>
    %95 = arith.addf %91, %94 : vector<16x1xf32>
    %96 = math.rsqrt %95 : vector<16x1xf32>
    %97 = vector.broadcast %96 : vector<16x1xf32> to vector<16x128xf32>
    %98 = arith.mulf %93, %97 : vector<16x128xf32>
    %99 = vector.broadcast %79 : vector<1x128xf32> to vector<16x128xf32>
    %100 = arith.mulf %98, %99 : vector<16x128xf32>
    %101 = vector.broadcast %80 : vector<1x128xf32> to vector<16x128xf32>
    %102 = arith.addf %100, %101 : vector<16x128xf32>
    %103 = vector.shape_cast %102 : vector<16x128xf32> to vector<2x8x128xf32>
    %c0_45 = arith.constant 0 : index
    %c0_46 = arith.constant 0 : index
    %c0_47 = arith.constant 0 : index
    %104 = vector.load %arg14[%c0_45, %c0_46, %c0_47] : memref<2x8x128xf32, #tpu.memory_space<vmem>>, vector<2x8x128xf32>
    tpu.vector_store %arg14[%c0_45, %c0_46, %c0_47], %103 {strides = array<i32>} : memref<2x8x128xf32, #tpu.memory_space<vmem>>, vector<2x8x128xf32>,
    return
  }
  func.func @transform_0(%arg0: i32) -> (i32, i32, i32) {
    %c0_i32 = arith.constant 0 : i32
    %c0_i32_0 = arith.constant 0 : i32
    %c0_i32_1 = arith.constant 0 : i32
    return %arg0, %c0_i32, %c0_i32_0 : i32, i32, i32
  }
  func.func @transform_1(%arg0: i32) -> (i32, i32) {
    %c0_i32 = arith.constant 0 : i32
    %c0_i32_0 = arith.constant 0 : i32
    %c0_i32_1 = arith.constant 0 : i32
    return %c0_i32, %c0_i32_0 : i32, i32
  }
  func.func @transform_2(%arg0: i32) -> (i32, i32) {
    %c0_i32 = arith.constant 0 : i32
    %c0_i32_0 = arith.constant 0 : i32
    %c0_i32_1 = arith.constant 0 : i32
    return %c0_i32, %c0_i32_0 : i32, i32
  }
  func.func @transform_3(%arg0: i32) -> (i32, i32) {
    %c0_i32 = arith.constant 0 : i32
    %c0_i32_0 = arith.constant 0 : i32
    %c0_i32_1 = arith.constant 0 : i32
    return %c0_i32, %c0_i32_0 : i32, i32
  }
  func.func @transform_4(%arg0: i32) -> (i32, i32) {
    %c0_i32 = arith.constant 0 : i32
    %c0_i32_0 = arith.constant 0 : i32
    %c0_i32_1 = arith.constant 0 : i32
    return %c0_i32, %c0_i32_0 : i32, i32
  }
  func.func @transform_5(%arg0: i32) -> (i32, i32) {
    %c0_i32 = arith.constant 0 : i32
    %c0_i32_0 = arith.constant 0 : i32
    %c0_i32_1 = arith.constant 0 : i32
    return %c0_i32, %c0_i32_0 : i32, i32
  }
  func.func @transform_6(%arg0: i32) -> (i32, i32) {
    %c0_i32 = arith.constant 0 : i32
    %c0_i32_0 = arith.constant 0 : i32
    %c0_i32_1 = arith.constant 0 : i32
    return %c0_i32, %c0_i32_0 : i32, i32
  }
  func.func @transform_7(%arg0: i32) -> (i32, i32) {
    %c0_i32 = arith.constant 0 : i32
    %c0_i32_0 = arith.constant 0 : i32
    %c0_i32_1 = arith.constant 0 : i32
    return %c0_i32, %c0_i32_0 : i32, i32
  }
  func.func @transform_8(%arg0: i32) -> (i32, i32) {
    %c0_i32 = arith.constant 0 : i32
    %c0_i32_0 = arith.constant 0 : i32
    %c0_i32_1 = arith.constant 0 : i32
    return %c0_i32, %c0_i32_0 : i32, i32
  }
  func.func @transform_9(%arg0: i32) -> (i32, i32) {
    %c0_i32 = arith.constant 0 : i32
    %c0_i32_0 = arith.constant 0 : i32
    %c0_i32_1 = arith.constant 0 : i32
    return %c0_i32, %c0_i32_0 : i32, i32
  }
  func.func @transform_10(%arg0: i32) -> (i32, i32) {
    %c0_i32 = arith.constant 0 : i32
    %c0_i32_0 = arith.constant 0 : i32
    %c0_i32_1 = arith.constant 0 : i32
    return %c0_i32, %c0_i32_0 : i32, i32
  }
  func.func @transform_11(%arg0: i32) -> (i32, i32) {
    %c0_i32 = arith.constant 0 : i32
    %c0_i32_0 = arith.constant 0 : i32
    %c0_i32_1 = arith.constant 0 : i32
    return %c0_i32, %c0_i32_0 : i32, i32
  }
  func.func @transform_12(%arg0: i32) -> (i32, i32) {
    %c0_i32 = arith.constant 0 : i32
    %c0_i32_0 = arith.constant 0 : i32
    %c0_i32_1 = arith.constant 0 : i32
    return %c0_i32, %c0_i32_0 : i32, i32
  }
  func.func @transform_13(%arg0: i32) -> (i32, i32, i32) {
    %c0_i32 = arith.constant 0 : i32
    %c0_i32_0 = arith.constant 0 : i32
    %c0_i32_1 = arith.constant 0 : i32
    return %arg0, %c0_i32, %c0_i32_0 : i32, i32, i32
  }
}

</mosaic_0001>

<bundles_post_ra>
// kernel: tpu_custom_call.1
= control target key start
LH: loop header
LB: loop body
LE: loop exit
PB: predicated region body
PF: predicated region fallthrough
CT: control target
= control target key end

     0   :  { %18 = vsyncpa [#allocation3], 0  ;;  %s4520_s0 = inlined_call_operand.hbm [shape: f32[2,8,128], index: 0, kind: input, shape index: {}]   ;;  %s4521_s1 = inlined_call_operand.hbm [shape: f32[128,384], index: 1, kind: input, shape index: {}]   ;;  %s4522_s2 = inlined_call_operand.vmem [shape: f32[1,384], index: 2, kind: input, shape index: {}]   ;;  %s4523_s3 = inlined_call_operand.hbm [shape: f32[128,128], index: 3, kind: input, shape index: {}]   ;;  %s4524_s4 = inlined_call_operand.vmem [shape: f32[1,128], index: 4, kind: input, shape index: {}]   ;;  %s4525_s5 = inlined_call_operand.vmem [shape: f32[1,128], index: 5, kind: input, shape index: {}]   ;;  %s4526_s6 = inlined_call_operand.vmem [shape: f32[1,128], index: 6, kind: input, shape index: {}]   ;;  %s4527_s7 = inlined_call_operand.hbm [shape: f32[128,256], index: 7, kind: input, shape index: {}]   ;;  %s4528_s8 = inlined_call_operand.vmem [shape: f32[1,256], index: 8, kind: input, shape index: {}]   ;;  %s4529_s9 = inlined_call_operand.hbm [shape: f32[256,128], index: 9, kind: input, shape index: {}]   ;;  %s4530_s10 = inlined_call_operand.vmem [shape: f32[1,128], index: 10, kind: input, shape index: {}]   ;;  %s4531_s11 = inlined_call_operand.vmem [shape: f32[1,128], index: 11, kind: input, shape index: {}]   ;;  %s4532_s12 = inlined_call_operand.vmem [shape: f32[1,128], index: 12, kind: input, shape index: {}]   ;;  %s4533_s13 = inlined_call_operand.hbm [shape: f32[2,8,128], index: 13, kind: output, shape index: {}]  }
   0x1   :  { %19 = vsyncpa [#allocation6], 0 }
   0x2   :  { %20 = vsyncpa [#allocation9], 0 }
   0x3   :  { %21 = vsyncpa [#allocation4], 0  ;;  %s3917_s25 = smov [#allocation5]   ;;  %s3777_s29 = scalar_lea.hbm %s4521_s1, 6144 }
   0x4   :  { %s39_s26 = sshll.u32 %s3917_s25, 4  ;;  %p3778_p0 = scmp.ne.s32.totalorder %s4521_s1, %s3777_s29  ;;  %s40_s26 = int_to_ptr.vmem [resolvable:$true] %s39_s26 }
   0x5   :  { %p3781_p1 = scmp.lt.u32.totalorder %s3777_s29, %s4521_s1 }
   0x7   :  { %p3783_p2 = pnand %p3781_p1, %p3778_p0 }
   0x9   :  { %3786 = shalt.err (!%p3783_p2)
}
   0xa   :  { %s3787_s17 = scalar_lea.vmem %s40_s26, 6144  ;;  %p3792_p4 = scmp.lt.s32.totalorder %s40_s26, %s40_s26 }
   0xb   :  { %p3788_p3 = scmp.ne.s32.totalorder %s40_s26, %s3787_s17  ;;  %p3793_p5 = scmp.lt.s32.totalorder %s3787_s17, %s3787_s17 }
   0xd   :  { %p3794_p6 = por %p3793_p5, %p3792_p4 }
   0xf   :  { %p3795_p7 = pnand %p3794_p6, %p3788_p3 }
  0x11   :  { %3798 = shalt.err (!%p3795_p7)
}
  0x12   :  { %s3918_s18 = smov 384   ;;  %s3919_s19 = smov 24  }
  0x13   :  { %45 = dma.hbm_to_vmem [thread:$0]  %s4521_s1, 6144, %s40_s26, [#allocation6], %s3918_s18, %s3918_s18, %s3919_s19  }
  0x14   :  { %s3920_s22 = smov [#allocation8]   ;;  %s3799_s27 = scalar_lea.hbm %s4527_s7, 4096 }
  0x15   :  { %s71_s23 = sshll.u32 %s3920_s22, 4  ;;  %p3800_p8 = scmp.ne.s32.totalorder %s4527_s7, %s3799_s27  ;;  %s72_s23 = int_to_ptr.vmem [resolvable:$true] %s71_s23 }
  0x16   :  { %p3803_p9 = scmp.lt.u32.totalorder %s3799_s27, %s4527_s7 }
  0x18   :  { %p3805_p10 = pnand %p3803_p9, %p3800_p8 }
  0x1a   :  { %3808 = shalt.err (!%p3805_p10)
}
  0x1b   :  { %s3809_s15 = scalar_lea.vmem %s72_s23, 4096  ;;  %p3814_p12 = scmp.lt.s32.totalorder %s72_s23, %s72_s23 }
  0x1c   :  { %p3810_p11 = scmp.ne.s32.totalorder %s72_s23, %s3809_s15  ;;  %p3815_p13 = scmp.lt.s32.totalorder %s3809_s15, %s3809_s15 }
  0x1e   :  { %p3816_p0 = por %p3815_p13, %p3814_p12 }
  0x20   :  { %p3817_p1 = pnand %p3816_p0, %p3810_p11 }
  0x22   :  { %3820 = shalt.err (!%p3817_p1)
}
  0x23   :  { %s3921_s1 = smov 256   ;;  %s3922_s26 = smov 16  }
  0x24   :  { %77 = dma.hbm_to_vmem [thread:$0]  %s4527_s7, 4096, %s72_s23, [#allocation9], %s3921_s1, %s3921_s1, %s3922_s26  }
  0x25   :  { %s3923_s18 = smov [#allocation2]   ;;  %s3821_s22 = scalar_lea.hbm %s4520_s0, 256 }
  0x26   :  { %s27_s19 = sshll.u32 %s3923_s18, 4  ;;  %p3822_p2 = scmp.ne.s32.totalorder %s4520_s0, %s3821_s22  ;;  %s28_s19 = int_to_ptr.vmem [resolvable:$true] %s27_s19 }
  0x27   :  { %p3825_p3 = scmp.lt.u32.totalorder %s3821_s22, %s4520_s0 }
  0x29   :  { %p3827_p4 = pnand %p3825_p3, %p3822_p2 }
  0x2b   :  { %3830 = shalt.err (!%p3827_p4)
}
  0x2c   :  { %s3831_s29 = scalar_lea.vmem %s28_s19, 256  ;;  %p3836_p6 = scmp.lt.s32.totalorder %s28_s19, %s28_s19 }
  0x2d   :  { %p3832_p5 = scmp.ne.s32.totalorder %s28_s19, %s3831_s29  ;;  %p3837_p7 = scmp.lt.s32.totalorder %s3831_s29, %s3831_s29 }
  0x2f   :  { %p3838_p8 = por %p3837_p7, %p3836_p6 }
  0x31   :  { %p3839_p9 = pnand %p3838_p8, %p3832_p5 }
  0x33   :  { %3842 = shalt.err (!%p3839_p9)
}
  0x34   :  { %s3924_s7 = smov 128   ;;  %s3925_s23 = smov 8  }
  0x35   :  { %33 = dma.hbm_to_vmem [thread:$0]  %s4520_s0, 256, %s28_s19, [#allocation3], %s3924_s7, %s3924_s7, %s3925_s23  }
  0x36   :  { %s3926_s15 = smov [#allocation7]   ;;  %s3927_s26 = smov [#allocation10]  }
  0x37   :  { %s53_s1 = sshll.u32 %s3926_s15, 4  ;;  %s85_s16 = sshll.u32 %s3927_s26, 4  ;;  %s54_s1 = int_to_ptr.vmem [resolvable:$true] %s53_s1  ;;  %s86_s16 = int_to_ptr.vmem [resolvable:$true] %s85_s16 }
  0x38   :  { %s3843_s20 = scalar_lea.hbm %s4523_s3, 2048 }
  0x39   :  { %p3844_p10 = scmp.ne.s32.totalorder %s4523_s3, %s3843_s20  ;;  %p3847_p11 = scmp.lt.u32.totalorder %s3843_s20, %s4523_s3 }
  0x3b   :  { %p3849_p12 = pnand %p3847_p11, %p3844_p10 }
  0x3d   :  { %3852 = shalt.err (!%p3849_p12)
}
  0x3e   :  { %s3853_s0 = scalar_lea.vmem %s54_s1, 2048  ;;  %p3858_p0 = scmp.lt.s32.totalorder %s54_s1, %s54_s1 }
  0x3f   :  { %p3854_p13 = scmp.ne.s32.totalorder %s54_s1, %s3853_s0  ;;  %p3859_p1 = scmp.lt.s32.totalorder %s3853_s0, %s3853_s0 }
  0x41   :  { %p3860_p2 = por %p3859_p1, %p3858_p0 }
  0x43   :  { %p3861_p3 = pnand %p3860_p2, %p3854_p13 }
  0x45   :  { %3864 = shalt.err (!%p3861_p3)
}
  0x46   :  { %59 = dma.hbm_to_vmem [thread:$0]  %s4523_s3, 2048, %s54_s1, [#allocation6], %s3924_s7, %s3924_s7, %s3925_s23  }
  0x47   :  { %s3865_s30 = scalar_lea.hbm %s4529_s9, 4096 }
  0x48   :  { %p3866_p4 = scmp.ne.s32.totalorder %s4529_s9, %s3865_s30  ;;  %p3869_p5 = scmp.lt.u32.totalorder %s3865_s30, %s4529_s9 }
  0x4a   :  { %p3871_p6 = pnand %p3869_p5, %p3866_p4 }
  0x4c   :  { %3874 = shalt.err (!%p3871_p6)
}
  0x4d   :  { %s3875_s18 = scalar_lea.vmem %s86_s16, 4096  ;;  %p3880_p8 = scmp.lt.s32.totalorder %s86_s16, %s86_s16 }
  0x4e   :  { %p3876_p7 = scmp.ne.s32.totalorder %s86_s16, %s3875_s18  ;;  %p3881_p9 = scmp.lt.s32.totalorder %s3875_s18, %s3875_s18 }
  0x50   :  { %p3882_p10 = por %p3881_p9, %p3880_p8 }
  0x52   :  { %p3883_p11 = pnand %p3882_p10, %p3876_p7 }
  0x54   :  { %3886 = shalt.err (!%p3883_p11)
}
  0x55   :  { %91 = dma.hbm_to_vmem [thread:$0]  %s4529_s9, 4096, %s86_s16, [#allocation9], %s3924_s7, %s3924_s7, %s3925_s23  }
  0x56   :  { %3909 = dma.done.wait [#allocation3], 256  }
  0x57   :  { %3910 = vsyncadd [#allocation3], 4294967040 }
  0x58   :  { %3911 = dma.done.wait [#allocation6], 8192  }
  0x59   :  { %3912 = vsyncadd [#allocation6], 4294959104 }
  0x5a   :  { %3913 = dma.done.wait [#allocation9], 8192  }
  0x5b   :  { %3914 = vsyncadd [#allocation9], 4294959104  ;;  %v3928_v0 = vmov 0.0   ;;  %v116_v1 = vld [vmem:[#allocation5 + $0x8] sm:$0xff]  ;;  %v119_v2 = vld [vmem:[#allocation5 + $0x20] sm:$0xff]  ;;  %s3929_s20 = smov 32  }
  0x5c   :  { %244 = vmatprep.mubr.f32.mxu0 %v3928_v0  ;;  %v115_v3 = vld [vmem:[#allocation5] sm:$0xff]  ;;  %v3541_v4 = vpack.c.bf16 %v119_v2, %v116_v1  ;;  %v118_v5 = vld [vmem:[#allocation5 + $0x18] sm:$0xff]  ;;  %v125_v7 = vld [vmem:[#allocation5 + $0x50] sm:$0xff]  ;;  %s3930_s21 = smov 96   ;;  %vm3932_vm0 = vmmov 0   ;;  %vm1210_vm1 = vcmask 261120  }
  0x5d   :  { %v122_v6 = vld [vmem:[#allocation5 + $0x38] sm:$0xff]  ;;  %v3543_v8 = vpack.c.bf16 %v118_v5, %v115_v3  ;;  %v121_v10 = vld [vmem:[#allocation5 + $0x30] sm:$0xff]  ;;  %v124_v11 = vld [vmem:[#allocation5 + $0x48] sm:$0xff]  ;;  %vm1819_vm2 = vcmask 64512   ;;  %vm2790_vm3 = vcmask 523264   ;;  %vm2793_vm4 = vcmask 785408  }
  0x5e   :  { %v3545_v9 = vpack.c.bf16 %v125_v7, %v122_v6  ;;  %v128_v12 = vld [vmem:[#allocation5 + $0x68] sm:$0xff]  ;;  %3542 = vmatprep.subr.bf16.mxu0 %v3541_v4  ;;  %v131_v13 = vld [vmem:[#allocation5 + $0x80] sm:$0xff]  ;;  %v3547_v14 = vpack.c.bf16 %v124_v11, %v121_v10  ;;  %v130_v17 = vld [vmem:[#allocation5 + $0x78] sm:$0xff]  ;;  %s3935_s14 = smov [#allocation11]  }
  0x5f   :  { %3544 = vmatpush1.bf16.msra.mxu0 %v3543_v8  ;;  %v3549_v15 = vpack.c.bf16 %v131_v13, %v128_v12  ;;  %v127_v16 = vld [vmem:[#allocation5 + $0x60] sm:$0xff]  ;;  %v134_v18 = vld [vmem:[#allocation5 + $0x98] sm:$0xff]  ;;  %v137_v19 = vld [vmem:[#allocation5 + $0xb0] sm:$0xff]  ;;  %v165_v12 = vlaneseq  ;;  %s3225_s15 = sshll.u32 %s3935_s14, 4  ;;  %s3226_s15 = int_to_ptr.vmem [resolvable:$true] %s3225_s15 }
  0x60   :  { %3546 = vmatprep.subr.bf16.mxu0 %v3545_v9  ;;  %v3551_v20 = vpack.c.bf16 %v130_v17, %v127_v16  ;;  %v3553_v21 = vpack.c.bf16 %v137_v19, %v134_v18  ;;  %v133_v22 = vld [vmem:[#allocation5 + $0x90] sm:$0xff]  ;;  %v136_v23 = vld [vmem:[#allocation5 + $0xa8] sm:$0xff]  ;;  %v143_v25 = vld [vmem:[#allocation5 + $0xe0] sm:$0xff]  ;;  %s3887_s26 = scalar_lea.vmem %s3226_s15, 256  ;;  %p3892_p13 = scmp.lt.s32.totalorder %s3226_s15, %s3226_s15 }
  0x61   :  { %v140_v24 = vld [vmem:[#allocation5 + $0xc8] sm:$0xff]  ;;  %v113_v26 = vld [vmem:[#allocation2] sm:$0xff]  ;;  %v3555_v27 = vpack.c.bf16 %v136_v23, %v133_v22  ;;  %v139_v29 = vld [vmem:[#allocation5 + $0xc0] sm:$0xff]  ;;  %v4079_v13 = vshrl.u32 %v165_v12, 7  ;;  %p3888_p12 = scmp.ne.s32.totalorder %s3226_s15, %s3887_s26  ;;  %p3893_p0 = scmp.lt.s32.totalorder %s3887_s26, %s3887_s26 }
  0x62   :  { %3423 = vmatprep.mubr.f32.mxu1 %v113_v26  ;;  %v3557_v28 = vpack.c.bf16 %v143_v25, %v140_v24  ;;  %v142_v30 = vld [vmem:[#allocation5 + $0xd8] sm:$0xff]  ;;  %v149_v32 = vld [vmem:[#allocation5 + $0x110] sm:$0xff]  ;;  %v148_v36 = vld [vmem:[#allocation5 + $0x108] sm:$0xff] }
  0x63   :  { %3548 = vmatpush1.bf16.msra.mxu0 %v3547_v14  ;;  %v146_v31 = vld [vmem:[#allocation5 + $0xf8] sm:$0xff]  ;;  %v3559_v33 = vpack.c.bf16 %v142_v30, %v139_v29  ;;  %v145_v35 = vld [vmem:[#allocation5 + $0xf0] sm:$0xff]  ;;  %v152_v37 = vld [vmem:[#allocation5 + $0x128] sm:$0xff]  ;;  %v167_v14 = vsub.s32 0, %v4079_v13  ;;  %v3933_v29 = vmov 1983009808   ;;  %p3894_p1 = por %p3893_p0, %p3892_p13 }
  0x64   :  { %3550 = vmatprep.subr.bf16.mxu0 %v3549_v15  ;;  %v3561_v34 = vpack.c.bf16 %v149_v32, %v146_v31  ;;  %v155_v38 = vld [vmem:[#allocation5 + $0x140] sm:$0xff]  ;;  %v3563_v39 = vpack.c.bf16 %v148_v36, %v145_v35  ;;  %v154_v42 = vld [vmem:[#allocation5 + $0x138] sm:$0xff]  ;;  %v161_v44 = vld [vmem:[#allocation5 + $0x170] sm:$0xff]  ;;  %v171_v15 = vsub.s32 1, %v4079_v13  ;;  %v357_v30 = vunpack.c.l.s4 %v3933_v29 }
  0x65   :  { %v3565_v40 = vpack.c.bf16 %v155_v38, %v152_v37  ;;  %v151_v41 = vld [vmem:[#allocation5 + $0x120] sm:$0xff]  ;;  %v158_v43 = vld [vmem:[#allocation5 + $0x158] sm:$0xff]  ;;  %v157_v47 = vld [vmem:[#allocation5 + $0x150] sm:$0xff]  ;;  %v3934_v31 = vmov 1934713408   ;;  %p3895_p2 = pnand %p3894_p1, %p3888_p12 }
  0x66   :  { %v3567_v45 = vpack.c.bf16 %v154_v42, %v151_v41  ;;  %v3569_v46 = vpack.c.bf16 %v161_v44, %v158_v43  ;;  %v160_v48 = vld [vmem:[#allocation5 + $0x168] sm:$0xff]  ;;  %v114_v50 = vld [vmem:[#allocation2 + $0x8] sm:$0xff]  ;;  %v117_v51 = vld [vmem:[#allocation5 + $0x10] sm:$0xff]  ;;  %v389_v32 = vunpack.c.l.s4 %v3934_v31 }
  0x67   :  { %3552 = vmatpush1.bf16.msra.mxu0 %v3551_v20  ;;  %v3571_v49 = vpack.c.bf16 %v160_v48, %v157_v47  ;;  %v120_v52 = vld [vmem:[#allocation5 + $0x28] sm:$0xff]  ;;  %v123_v53 = vld [vmem:[#allocation5 + $0x40] sm:$0xff]  ;;  %v126_v55 = vld [vmem:[#allocation5 + $0x58] sm:$0xff] }
  0x68   :  { %3554 = vmatprep.subr.bf16.mxu0 %v3553_v21  ;;  %v3573_v54 = vpack.c.bf16 %v120_v52, %v117_v51  ;;  %v3577_v56 = vpack.c.bf16 %v126_v55, %v123_v53  ;;  %v129_v57 = vld [vmem:[#allocation5 + $0x70] sm:$0xff]  ;;  %v132_v58 = vld [vmem:[#allocation5 + $0x88] sm:$0xff]  ;;  %v135_v60 = vld [vmem:[#allocation5 + $0xa0] sm:$0xff]  ;;  %v390_v36 = vunpack.c.0.s8 %v389_v32 }
  0x69   :  { %v3581_v59 = vpack.c.bf16 %v132_v58, %v129_v57  ;;  %v138_v61 = vld [vmem:[#allocation5 + $0xb8] sm:$0xff]  ;;  %v141_v63 = vld [vmem:[#allocation5 + $0xd0] sm:$0xff]  ;;  %v144_v1 = vld [vmem:[#allocation5 + $0xe8] sm:$0xff] }
  0x6a   :  { %3574 = vmatprep.subr.bf16.mxu1 %v3573_v54  ;;  %v3585_v62 = vpack.c.bf16 %v138_v61, %v135_v60  ;;  %v3589_v2 = vpack.c.bf16 %v144_v1, %v141_v63  ;;  %v147_v3 = vld [vmem:[#allocation5 + $0x100] sm:$0xff]  ;;  %v150_v4 = vld [vmem:[#allocation5 + $0x118] sm:$0xff]  ;;  %v153_v6 = vld [vmem:[#allocation5 + $0x130] sm:$0xff]  ;;  %v4124_v44 = vsub.s32 %v390_v36, %v4079_v13 }
  0x6b   :  { %3556 = vmatpush1.bf16.msra.mxu0 %v3555_v27  ;;  %3576 = vmatpush3.bf16.msra.mxu1 %v3573_v54  ;;  %v3593_v5 = vpack.c.bf16 %v150_v4, %v147_v3  ;;  %v156_v7 = vld [vmem:[#allocation5 + $0x148] sm:$0xff]  ;;  %v159_v9 = vld [vmem:[#allocation5 + $0x160] sm:$0xff]  ;;  %v162_v10 = vld [vmem:[#allocation5 + $0x178] sm:$0xff] }
  0x6c   :  { %3558 = vmatprep.subr.bf16.mxu0 %v3557_v28  ;;  %3578 = vmatprep.subr.bf16.mxu1 %v3577_v56  ;;  %v3597_v8 = vpack.c.bf16 %v156_v7, %v153_v6  ;;  %v3601_v11 = vpack.c.bf16 %v162_v10, %v159_v9  ;;  %v4086_v16 = vld [vmem:[%s4522_s2] sm:$0x7]  ;;  %s3931_s2 = smov 64  }
  0x6d   :  { %v168_v17 = vrot.slane %v4086_v16, %v167_v14  ;;  %v172_v18 = vrot.slane %v4086_v16, %v171_v15 }
  0x6f   :  { %3560 = vmatpush1.bf16.msra.mxu0 %v3559_v33  ;;  %3580 = vmatpush3.bf16.msra.mxu1 %v3577_v56  ;;  %v358_v33 = vunpack.c.0.s8 %v357_v30 }
  0x70   :  { %3562 = vmatprep.subr.bf16.mxu0 %v3561_v34  ;;  %3582 = vmatprep.subr.bf16.mxu1 %v3581_v59 }
  0x71   :  { %v4121_v37 = vsub.s32 %v358_v33, %v4079_v13 }
  0x73   :  { %3564 = vmatpush1.bf16.msra.mxu0 %v3563_v39  ;;  %3584 = vmatpush3.bf16.msra.mxu1 %v3581_v59 }
  0x74   :  { %3566 = vmatprep.subr.bf16.mxu0 %v3565_v40  ;;  %3586 = vmatprep.subr.bf16.mxu1 %v3585_v62 }
  0x77   :  { %3568 = vmatpush1.bf16.msra.mxu0 %v3567_v45  ;;  %3588 = vmatpush3.bf16.msra.mxu1 %v3585_v62 }
  0x78   :  { %3570 = vmatprep.subr.bf16.mxu0 %v3569_v46  ;;  %3590 = vmatprep.subr.bf16.mxu1 %v3589_v2 }
  0x7b   :  { %3572 = vmatpush1.bf16.msra.mxu0 %v3571_v49  ;;  %3592 = vmatpush3.bf16.msra.mxu1 %v3589_v2 }
  0x7c   :  { %3426 = vmatprep.subr.mxu0 %v3928_v0  ;;  %3594 = vmatprep.subr.bf16.mxu1 %v3593_v5 }
  0x7e   :  { %245 = vmatmul.mubr.f32.vlgmr.msra.gmra.mrb[0].mxu0 %v113_v26 }
  0x7f   :  { %250 = vmatprep.mubr.f32.mxu0 %v3928_v0  ;;  %3596 = vmatpush3.bf16.msra.mxu1 %v3593_v5 }
  0x80   :  { %3598 = vmatprep.subr.bf16.mxu1 %v3597_v8 }
  0x82   :  { %251 = vmatmul.mubr.f32.gmra.mrb[2].mxu0 %v114_v50 }
  0x83   :  { %3600 = vmatpush3.bf16.msra.mxu1 %v3597_v8  ;;  %3428 = vmatprep.mubr.msk.f32.mxu0 %vm3932_vm0, %v3928_v0 }
  0x84   :  { %3602 = vmatprep.subr.bf16.mxu1 %v3601_v11 }
  0x87   :  { %3604 = vmatpush3.bf16.msra.mxu1 %v3601_v11 }
  0x88   :  { %3456 = vmatprep.subr.mxu1 %v3928_v0 }
  0x8a   :  { %3424 = vmatmul.mubr.f32.vlgmr.msra.gmra.mrb[0].mxu1 %v114_v50 }
  0x8b   :  { %3458 = vmatprep.mubr.msk.f32.mxu1 %vm3932_vm0, %v3928_v0 }
 0x151   :  { %v246_v19 = vpop.f32.mrb[0].mxu0 }
 0x152   :  { %v248_v20 = vpop.f32.mrb[1].mxu0  ;;  %v247_v21 = vadd.f32 %v246_v19, %v168_v17 }
 0x153   :  { %v249_v22 = vadd.f32 %v248_v20, %v172_v18 }
 0x154   :  { %v332_v25 = vmul.f32 0.17677669, %v247_v21 }
 0x155   :  { %640 = vrot.lane.b32.xlu1 %v249_v22, %s3929_s20  ;;  %628 = vrot.lane.b32.xlu0 %v249_v22, %s3930_s21  ;;  %v252_v23 = vpop.f32.mrb[2].mxu0 }
 0x156   :  { %v254_v24 = vpop.f32.mrb[3].mxu0  ;;  %v253_v27 = vadd.f32 %v252_v23, %v168_v17 }
 0x157   :  { %v4100_v26 = vadd.f32 %v254_v24, %v172_v18 }
 0x158   :  { %v4106_v28 = vmul.f32 0.17677669, %v253_v27 }
 0x159   :  { %634 = vrot.lane.b32.xlu0 %v249_v22, %s3931_s2  ;;  %336 = vrot.lane.b32.xlu1 %v332_v25, %s3930_s21 }
 0x15d   :  { %342 = vrot.lane.b32.xlu0 %v332_v25, %s3931_s2  ;;  %348 = vrot.lane.b32.xlu1 %v332_v25, %s3929_s20 }
 0x161   :  { %630 = vrot.lane.b32.xlu0 %v4100_v26, %s3930_s21  ;;  %636 = vrot.lane.b32.xlu1 %v4100_v26, %s3931_s2 }
 0x165   :  { %642 = vrot.lane.b32.xlu0 %v4100_v26, %s3929_s20  ;;  %338 = vrot.lane.b32.xlu1 %v4106_v28, %s3930_s21 }
 0x169   :  { %344 = vrot.lane.b32.xlu0 %v4106_v28, %s3931_s2  ;;  %350 = vrot.lane.b32.xlu1 %v4106_v28, %s3929_s20 }
 0x1c7   :  { %v641_v34 = vpop.permute.xlu1 %640  ;;  %v629_v35 = vpop.permute.xlu0 %628 }
 0x1c8   :  { %v662_v38 = vcombine.low %v629_v35, %v641_v34  ;;  %v663_v39 = vcombine.high %v629_v35, %v641_v34 }
 0x1ca   :  { %v670_v45 = vrot.slane %v662_v38, %v4121_v37  ;;  %v677_v46 = vrot.slane %v663_v39, %v4121_v37 }
 0x1cb   :  { %v635_v40 = vpop.permute.xlu0 %634  ;;  %v337_v41 = vpop.permute.xlu1 %336 }
 0x1cc   :  { %v646_v42 = vcombine.low %v249_v22, %v635_v40  ;;  %v647_v43 = vcombine.high %v249_v22, %v635_v40 }
 0x1ce   :  { %v654_v47 = vrot.slane %v646_v42, %v4121_v37  ;;  %v661_v48 = vrot.slane %v647_v43, %v4121_v37 }
 0x1cf   :  { %v343_v49 = vpop.permute.xlu0 %342  ;;  %v349_v50 = vpop.permute.xlu1 %348 }
 0x1d0   :  { %v678_v51 = vcombine.low %v654_v47, %v670_v45  ;;  %v679_v52 = vcombine.high %v654_v47, %v670_v45  ;;  %v694_v53 = vcombine.low %v661_v48, %v677_v46  ;;  %v695_v54 = vcombine.high %v661_v48, %v677_v46 }
 0x1d1   :  { %v354_v55 = vcombine.low %v332_v25, %v343_v49  ;;  %v355_v56 = vcombine.high %v332_v25, %v343_v49  ;;  %v370_v57 = vcombine.low %v337_v41, %v349_v50  ;;  %v371_v58 = vcombine.high %v337_v41, %v349_v50 }
 0x1d2   :  { %v686_v59 = vrot.slane %v678_v51, %v4124_v44  ;;  %v693_v60 = vrot.slane %v679_v52, %v4124_v44  ;;  %v702_v61 = vrot.slane %v694_v53, %v4124_v44  ;;  %v709_v62 = vrot.slane %v695_v54, %v4124_v44 }
 0x1d3   :  { %v362_v63 = vrot.slane %v354_v55, %v4121_v37  ;;  %v369_v1 = vrot.slane %v355_v56, %v4121_v37  ;;  %v378_v2 = vrot.slane %v370_v57, %v4121_v37  ;;  %v385_v3 = vrot.slane %v371_v58, %v4121_v37  ;;  %v631_v4 = vpop.permute.xlu0 %630  ;;  %v637_v5 = vpop.permute.xlu1 %636 }
 0x1d4   :  { %v782_v6 = vcombine.low %v686_v59, %v693_v60  ;;  %v3243_v7 = vcombine.high %v686_v59, %v693_v60  ;;  %v798_v8 = vcombine.low %v702_v61, %v709_v62  ;;  %v3244_v9 = vcombine.high %v702_v61, %v709_v62  ;;  %v4182_v59 = vpop.f32.mrb[0].mxu1 }
 0x1d5   :  { %v386_v10 = vcombine.low %v362_v63, %v378_v2  ;;  %v387_v11 = vcombine.high %v362_v63, %v378_v2  ;;  %v402_v12 = vcombine.low %v369_v1, %v385_v3  ;;  %v403_v17 = vcombine.high %v369_v1, %v385_v3  ;;  %v4188_v1 = vpop.f32.mrb[1].mxu1 }
 0x1d6   :  { %v4143_v23 = vrot.slane %v782_v6, %v4121_v37  ;;  %v4146_v24 = vrot.slane %v3243_v7, %v4121_v37  ;;  %v4149_v25 = vrot.slane %v798_v8, %v4121_v37  ;;  %v4152_v27 = vrot.slane %v3244_v9, %v4121_v37 }
 0x1d7   :  { %v394_v18 = vrot.slane %v386_v10, %v4124_v44  ;;  %v401_v19 = vrot.slane %v387_v11, %v4124_v44  ;;  %v410_v20 = vrot.slane %v402_v12, %v4124_v44  ;;  %v417_v21 = vrot.slane %v403_v17, %v4124_v44  ;;  %v643_v22 = vpop.permute.xlu0 %642  ;;  %v339_v29 = vpop.permute.xlu1 %338 }
 0x1d8   :  { %v714_v34 = vcombine.low %v4100_v26, %v637_v5  ;;  %v715_v35 = vcombine.high %v4100_v26, %v637_v5  ;;  %v730_v36 = vcombine.low %v631_v4, %v643_v22  ;;  %v731_v38 = vcombine.high %v631_v4, %v643_v22 }
 0x1d9   :  { %v490_v30 = vcombine.low %v394_v18, %v401_v19  ;;  %v3239_v31 = vcombine.high %v394_v18, %v401_v19  ;;  %v506_v32 = vcombine.low %v410_v20, %v417_v21  ;;  %v3240_v33 = vcombine.high %v410_v20, %v417_v21 }
 0x1da   :  { %v722_v43 = vrot.slane %v714_v34, %v4121_v37  ;;  %v729_v45 = vrot.slane %v715_v35, %v4121_v37  ;;  %v738_v26 = vrot.slane %v730_v36, %v4121_v37  ;;  %v745_v46 = vrot.slane %v731_v38, %v4121_v37 }
 0x1db   :  { %v4157_v39 = vrot.slane %v490_v30, %v4121_v37  ;;  %v4160_v40 = vrot.slane %v3239_v31, %v4121_v37  ;;  %v4163_v41 = vrot.slane %v506_v32, %v4121_v37  ;;  %v4166_v42 = vrot.slane %v3240_v33, %v4121_v37  ;;  %v345_v47 = vpop.permute.xlu0 %344  ;;  %v351_v54 = vpop.permute.xlu1 %350 }
 0x1dc   :  { %v814_v48 = vcombine.low %v4143_v23, %v4146_v24  ;;  %v830_v49 = vcombine.low %v4149_v25, %v4152_v27  ;;  %v746_v50 = vcombine.low %v722_v43, %v738_v26  ;;  %v747_v51 = vcombine.high %v722_v43, %v738_v26 }
 0x1dd   :  { %v762_v52 = vcombine.low %v729_v45, %v745_v46  ;;  %v763_v53 = vcombine.high %v729_v45, %v745_v46  ;;  %v522_v55 = vcombine.low %v4157_v39, %v4160_v40  ;;  %v538_v56 = vcombine.low %v4163_v41, %v4166_v42 }
 0x1de   :  { %v422_v57 = vcombine.low %v4106_v28, %v345_v47  ;;  %v423_v58 = vcombine.high %v4106_v28, %v345_v47  ;;  %v754_v60 = vrot.slane %v746_v50, %v4124_v44  ;;  %v761_v61 = vrot.slane %v747_v51, %v4124_v44 }
 0x1df   :  { %v770_v62 = vrot.slane %v762_v52, %v4124_v44  ;;  %v777_v63 = vrot.slane %v763_v53, %v4124_v44  ;;  %v438_v4 = vcombine.low %v339_v29, %v351_v54  ;;  %v439_v5 = vcombine.high %v339_v29, %v351_v54 }
 0x1e0   :  { %v430_v2 = vrot.slane %v422_v57, %v4121_v37  ;;  %v437_v3 = vrot.slane %v423_v58, %v4121_v37  ;;  %v850_v28 = vcombine.low %v754_v60, %v761_v61  ;;  %v3245_v6 = vcombine.high %v754_v60, %v761_v61 }
 0x1e1   :  { %v866_v7 = vcombine.low %v770_v62, %v777_v63  ;;  %v3246_v8 = vcombine.high %v770_v62, %v777_v63  ;;  %v530_v9 = vrot.slane %v522_v55, %v4124_v44  ;;  %v546_v10 = vrot.slane %v538_v56, %v4124_v44 }
 0x1e2   :  { %v446_v11 = vrot.slane %v438_v4, %v4121_v37  ;;  %v453_v12 = vrot.slane %v439_v5, %v4121_v37  ;;  %v4197_v17 = vrot.slane %v850_v28, %v4121_v37  ;;  %v4200_v18 = vrot.slane %v3245_v6, %v4121_v37 }
 0x1e3   :  { %v822_v19 = vrot.slane %v814_v48, %v4124_v44  ;;  %v838_v20 = vrot.slane %v830_v49, %v4124_v44  ;;  %v815_v31 = vcombine.high %v4143_v23, %v4146_v24  ;;  %v873_v32 = vrot.slane %v866_v7, %v4121_v37 }
 0x1e4   :  { %v454_v21 = vcombine.low %v430_v2, %v446_v11  ;;  %v455_v22 = vcombine.high %v430_v2, %v446_v11  ;;  %v470_v29 = vcombine.low %v437_v3, %v453_v12  ;;  %v471_v30 = vcombine.high %v437_v3, %v453_v12 }
 0x1e5   :  { %v881_v33 = vrot.slane %v3246_v8, %v4121_v37  ;;  %v175_v34 = vsub.s32 2, %v4079_v13  ;;  %v831_v45 = vcombine.high %v4149_v25, %v4152_v27  ;;  %v883_v23 = vcombine.high %v4197_v17, %v4200_v18  ;;  %v3282_v13 = vld [vmem:[%s4530_s10] ss:$0 sm:$0xff] }
 0x1e6   :  { %v462_v35 = vrot.slane %v454_v21, %v4124_v44  ;;  %v469_v36 = vrot.slane %v455_v22, %v4124_v44  ;;  %v478_v38 = vrot.slane %v470_v29, %v4124_v44  ;;  %v485_v43 = vrot.slane %v471_v30, %v4124_v44 }
 0x1e7   :  { %v846_v24 = vcombine.low %v822_v19, %v838_v20  ;;  %v554_v26 = vcombine.low %v530_v9, %v546_v10  ;;  %v523_v50 = vcombine.high %v4157_v39, %v4160_v40  ;;  %v539_v51 = vcombine.high %v4163_v41, %v4166_v42 }
 0x1e8   :  { %v558_v46 = vcombine.low %v462_v35, %v469_v36  ;;  %v3241_v47 = vcombine.high %v462_v35, %v469_v36  ;;  %v574_v48 = vcombine.low %v478_v38, %v485_v43  ;;  %v3242_v49 = vcombine.high %v478_v38, %v485_v43 }
 0x1e9   :  { %v899_v52 = vcombine.high %v873_v32, %v881_v33  ;;  %3427 = vmatpush3.xpose.msk.msra.mxu0 %vm1210_vm1, %v846_v24  ;;  %v847_v55 = vcombine.high %v822_v19, %v838_v20  ;;  %v829_v56 = vrot.slane %v815_v31, %v4124_v44  ;;  %v845_v39 = vrot.slane %v831_v45, %v4124_v44 }
 0x1ea   :  { %v565_v25 = vrot.slane %v558_v46, %v4121_v37  ;;  %v573_v27 = vrot.slane %v3241_v47, %v4121_v37  ;;  %v581_v53 = vrot.slane %v574_v48, %v4121_v37  ;;  %v589_v54 = vrot.slane %v3242_v49, %v4121_v37  ;;  %3431 = vmatprep.subr.mxu0 %v3928_v0 }
 0x1eb   :  { %v897_v40 = vrot.slane %v883_v23, %v4124_v44  ;;  %v176_v57 = vrot.slane %v4086_v16, %v175_v34  ;;  %v537_v58 = vrot.slane %v523_v50, %v4124_v44  ;;  %v553_v60 = vrot.slane %v539_v51, %v4124_v44 }
 0x1ec   :  { %v591_v41 = vcombine.high %v565_v25, %v573_v27  ;;  %v607_v42 = vcombine.high %v581_v53, %v589_v54  ;;  %3429 = vmatmul.mubr.msk.f32.vlgmr.msra.gmra.mrb[4].mxu0 %vm1210_vm1, %v554_v26  ;;  %v913_v61 = vrot.slane %v899_v52, %v4124_v44  ;;  %v882_v62 = vcombine.low %v4197_v17, %v4200_v18 }
 0x1ed   :  { %3432 = vmatpush3.xpose.msk.msra.mxu0 %vm1210_vm1, %v847_v55  ;;  %3433 = vmatprep.mubr.msk.f32.mxu0 %vm3932_vm0, %v3928_v0  ;;  %v555_v63 = vcombine.high %v530_v9, %v546_v10  ;;  %v898_v3 = vcombine.low %v873_v32, %v881_v33  ;;  %v848_v4 = vcombine.low %v829_v56, %v845_v39 }
 0x1ee   :  { %3436 = vmatprep.subr.mxu0 %v3928_v0  ;;  %v605_v2 = vrot.slane %v591_v41, %v4124_v44  ;;  %v621_v16 = vrot.slane %v607_v42, %v4124_v44  ;;  %v916_v5 = vcombine.low %v897_v40, %v913_v61  ;;  %v4244_v28 = vadd.f32 %v4182_v59, %v176_v57 }
 0x1ef   :  { %v556_v6 = vcombine.low %v537_v58, %v553_v60  ;;  %v4251_v7 = vadd.f32 %v4188_v1, %v176_v57  ;;  %v590_v8 = vcombine.low %v565_v25, %v573_v27  ;;  %v606_v9 = vcombine.low %v581_v53, %v589_v54 }
 0x1f0   :  { %3434 = vmatmul.mubr.msk.f32.vlgmr.msra.gmra.mrb[6].mxu0 %vm1210_vm1, %v555_v63  ;;  %3457 = vmatpush3.xpose.msk.msra.mxu1 %vm1210_vm1, %v916_v5  ;;  %v624_v10 = vcombine.low %v605_v2, %v621_v16  ;;  %v849_v59 = vcombine.high %v829_v56, %v845_v39  ;;  %v890_v11 = vrot.slane %v882_v62, %v4124_v44 }
 0x1f1   :  { %3437 = vmatpush3.xpose.msk.msra.mxu0 %vm1210_vm1, %v848_v4  ;;  %3438 = vmatprep.mubr.msk.f32.mxu0 %vm3932_vm0, %v3928_v0  ;;  %v906_v12 = vrot.slane %v898_v3, %v4124_v44  ;;  %v557_v1 = vcombine.high %v537_v58, %v553_v60  ;;  %v598_v17 = vrot.slane %v590_v8, %v4124_v44 }
 0x1f2   :  { %3441 = vmatprep.subr.mxu0 %v3928_v0  ;;  %920 = vrot.lane.b32.xlu1 %v4251_v7, %s3930_s21  ;;  %v614_v18 = vrot.slane %v606_v9, %v4124_v44  ;;  %v917_v29 = vcombine.high %v897_v40, %v913_v61  ;;  %v625_v30 = vcombine.high %v605_v2, %v621_v16 }
 0x1f3   :  { %3466 = vmatprep.subr.mxu1 %v3928_v0  ;;  %3459 = vmatmul.mubr.msk.f32.vlgmr.msra.gmra.mrb[2].mxu1 %vm1210_vm1, %v624_v10  ;;  %v914_v19 = vcombine.low %v890_v11, %v906_v12  ;;  %v915_v21 = vcombine.high %v890_v11, %v906_v12 }
 0x1f4   :  { %3439 = vmatmul.mubr.msk.f32.vlgmr.msra.gmra.mrb[8].mxu0 %vm1210_vm1, %v556_v6  ;;  %3468 = vmatprep.mubr.msk.f32.mxu1 %vm3932_vm0, %v3928_v0  ;;  %v622_v20 = vcombine.low %v598_v17, %v614_v18  ;;  %v623_v22 = vcombine.high %v598_v17, %v614_v18 }
 0x1f5   :  { %3442 = vmatpush3.xpose.msk.msra.mxu0 %vm1210_vm1, %v849_v59  ;;  %3443 = vmatprep.mubr.msk.f32.mxu0 %vm3932_vm0, %v3928_v0 }
 0x1f6   :  { %3446 = vmatprep.subr.mxu0 %v3928_v0 }
 0x1f8   :  { %3444 = vmatmul.mubr.msk.f32.vlgmr.msra.gmra.mrb[10].mxu0 %vm1210_vm1, %v557_v1 }
 0x1f9   :  { %3447 = vmatpush3.xpose.msk.msra.mxu0 %vm1210_vm1, %v914_v19  ;;  %3448 = vmatprep.mubr.msk.f32.mxu0 %vm3932_vm0, %v3928_v0 }
 0x1fa   :  { %3451 = vmatprep.subr.mxu0 %v3928_v0 }
 0x1fc   :  { %3449 = vmatmul.mubr.msk.f32.vlgmr.msra.gmra.mrb[12].mxu0 %vm1210_vm1, %v622_v20 }
 0x1fd   :  { %3452 = vmatpush3.xpose.msk.msra.mxu0 %vm1210_vm1, %v915_v21  ;;  %3453 = vmatprep.mubr.msk.f32.mxu0 %vm3932_vm0, %v3928_v0 }
 0x1fe   :  { %3461 = vmatprep.subr.mxu0 %v3928_v0 }
 0x200   :  { %3454 = vmatmul.mubr.msk.f32.vlgmr.msra.gmra.mrb[14].mxu0 %vm1210_vm1, %v623_v22 }
 0x201   :  { %3462 = vmatpush3.xpose.msk.msra.mxu0 %vm1210_vm1, %v917_v29  ;;  %3463 = vmatprep.mubr.msk.f32.mxu0 %vm3932_vm0, %v3928_v0 }
 0x202   :  { %3471 = vmatprep.subr.mxu0 %v3928_v0 }
 0x204   :  { %3464 = vmatmul.mubr.msk.f32.vlgmr.msra.gmra.mrb[16].mxu0 %vm1210_vm1, %v625_v30 }
 0x205   :  { %3473 = vmatprep.mubr.msk.f32.mxu0 %vm3932_vm0, %v3928_v0 }
 0x264   :  { %v921_v56 = vpop.permute.xlu1 %920 }
 0x2bf   :  { %v1283_v31 = vpop.f32.mrb[4].mxu0 }
 0x2c0   :  { %v3430_v32 = vpop.f32.mrb[5].mxu0  ;;  %v1820_v33 = vsel %vm1819_vm2, %v1283_v31, -inf }
 0x2c1   :  { %1821 = vmax.xlane.f32.xlu0 %v1820_v33 }
 0x2c3   :  { %v1359_v34 = vpop.f32.mrb[6].mxu0 }
 0x2c4   :  { %v3435_v35 = vpop.f32.mrb[7].mxu0  ;;  %v1823_v36 = vsel %vm1819_vm2, %v1359_v34, -inf }
 0x2c5   :  { %1824 = vmax.xlane.f32.xlu1 %v1823_v36 }
 0x2c6   :  { %v1739_v23 = vpop.f32.mrb[2].mxu1 }
 0x2c7   :  { %v1435_v38 = vpop.f32.mrb[8].mxu0  ;;  %v3460_v24 = vpop.f32.mrb[3].mxu1  ;;  %v1838_v26 = vsel %vm1819_vm2, %v1739_v23, -inf }
 0x2c8   :  { %v3440_v43 = vpop.f32.mrb[9].mxu0  ;;  %v1826_v45 = vsel %vm1819_vm2, %v1435_v38, -inf }
 0x2c9   :  { %1827 = vmax.xlane.f32.xlu0 %v1826_v45  ;;  %1839 = vmax.xlane.f32.xlu1 %v1838_v26 }
 0x2cb   :  { %v1511_v46 = vpop.f32.mrb[10].mxu0 }
 0x2cc   :  { %v3445_v47 = vpop.f32.mrb[11].mxu0  ;;  %v1829_v48 = vsel %vm1819_vm2, %v1511_v46, -inf }
 0x2cd   :  { %1830 = vmax.xlane.f32.xlu0 %v1829_v48 }
 0x2cf   :  { %v1587_v49 = vpop.f32.mrb[12].mxu0 }
 0x2d0   :  { %v3450_v50 = vpop.f32.mrb[13].mxu0  ;;  %v1832_v51 = vsel %vm1819_vm2, %v1587_v49, -inf }
 0x2d1   :  { %1833 = vmax.xlane.f32.xlu1 %v1832_v51 }
 0x2d3   :  { %v1663_v52 = vpop.f32.mrb[14].mxu0 }
 0x2d4   :  { %v3455_v25 = vpop.f32.mrb[15].mxu0  ;;  %v1835_v27 = vsel %vm1819_vm2, %v1663_v52, -inf }
 0x2d5   :  { %1836 = vmax.xlane.f32.xlu0 %v1835_v27 }
 0x2d7   :  { %v4295_v53 = vpop.f32.mrb[16].mxu0 }
 0x2d8   :  { %v3465_v54 = vpop.f32.mrb[17].mxu0  ;;  %v1841_v55 = vsel %vm1819_vm2, %v4295_v53, -inf }
 0x2d9   :  { %1842 = vmax.xlane.f32.xlu0 %v1841_v55 }
 0x2e2   :  { %932 = vrot.lane.b32.xlu1 %v4251_v7, %s3929_s20 }
 0x2ef   :  { %926 = vrot.lane.b32.xlu0 %v4251_v7, %s3931_s2 }
 0x34e   :  { %v1822_v39 = vpop.xlane.xlu0 %1821 }
 0x34f   :  { %v1844_v40 = vsub.f32 %v1283_v31, %v1822_v39 }
 0x351   :  { %v1852_v41 = vmul.f32 1.442695, %v1844_v40 }
 0x352   :  { %v1825_v42 = vpop.xlane.xlu1 %1824 }
 0x353   :  { %3735 = vpow2.f32 %v1852_v41  ;;  %v1845_v57 = vsub.f32 %v1359_v34, %v1825_v42 }
 0x355   :  { %v1854_v58 = vmul.f32 1.442695, %v1845_v57 }
 0x356   :  { %v1828_v60 = vpop.xlane.xlu0 %1827  ;;  %v1840_v62 = vpop.xlane.xlu1 %1839 }
 0x357   :  { %3737 = vpow2.f32 %v1854_v58  ;;  %v1846_v61 = vsub.f32 %v1435_v38, %v1828_v60  ;;  %v1850_v2 = vsub.f32 %v1739_v23, %v1840_v62 }
 0x359   :  { %v1856_v63 = vmul.f32 1.442695, %v1846_v61  ;;  %v1864_v4 = vmul.f32 1.442695, %v1850_v2 }
 0x35a   :  { %v1831_v16 = vpop.xlane.xlu0 %1830 }
 0x35b   :  { %3739 = vpow2.f32 %v1856_v63  ;;  %v1847_v3 = vsub.f32 %v1511_v46, %v1831_v16 }
 0x35c   :  { %3741 = vpow2.f32 %v1864_v4 }
 0x35d   :  { %v4303_v5 = vpop.eup %3735  ;;  %v1858_v6 = vmul.f32 1.442695, %v1847_v3 }
 0x35e   :  { %v1834_v8 = vpop.xlane.xlu1 %1833  ;;  %v1868_v9 = vsel %vm1819_vm2, %v4303_v5, 0.0 }
 0x35f   :  { %3743 = vpow2.f32 %v1858_v6  ;;  %v1848_v10 = vsub.f32 %v1587_v49, %v1834_v8  ;;  %1869 = vadd.xlane.f32.xlu1 %v1868_v9 }
 0x361   :  { %v4307_v59 = vpop.eup %3737  ;;  %v1860_v11 = vmul.f32 1.442695, %v1848_v10 }
 0x362   :  { %v1837_v12 = vpop.xlane.xlu0 %1836  ;;  %v1871_v1 = vsel %vm1819_vm2, %v4307_v59, 0.0  ;;  %v933_v20 = vpop.permute.xlu1 %932 }
 0x363   :  { %3745 = vpow2.f32 %v1860_v11  ;;  %v1849_v17 = vsub.f32 %v1663_v52, %v1837_v12  ;;  %1872 = vadd.xlane.f32.xlu0 %v1871_v1  ;;  %v954_v32 = vcombine.low %v921_v56, %v933_v20  ;;  %v955_v33 = vcombine.high %v921_v56, %v933_v20 }
 0x365   :  { %v4311_v18 = vpop.eup %3739  ;;  %v1862_v19 = vmul.f32 1.442695, %v1849_v17  ;;  %v962_v45 = vrot.slane %v954_v32, %v4121_v37  ;;  %v969_v23 = vrot.slane %v955_v33, %v4121_v37 }
 0x366   :  { %v1843_v21 = vpop.xlane.xlu0 %1842  ;;  %v1874_v22 = vsel %vm1819_vm2, %v4311_v18, 0.0  ;;  %v4315_v29 = vpop.eup %3741 }
 0x367   :  { %3747 = vpow2.f32 %v1862_v19  ;;  %1875 = vadd.xlane.f32.xlu1 %v1874_v22  ;;  %v1886_v30 = vsel %vm1819_vm2, %v4315_v29, 0.0  ;;  %v1851_v11 = vsub.f32 %v4295_v53, %v1843_v21 }
 0x368   :  { %1887 = vadd.xlane.f32.xlu0 %v1886_v30 }
 0x369   :  { %v4319_v31 = vpop.eup %3743  ;;  %v1866_v12 = vmul.f32 1.442695, %v1851_v11 }
 0x36a   :  { %v927_v34 = vpop.permute.xlu0 %926  ;;  %v1877_v38 = vsel %vm1819_vm2, %v4319_v31, 0.0 }
 0x36b   :  { %v938_v35 = vcombine.low %v4251_v7, %v927_v34  ;;  %v939_v36 = vcombine.high %v4251_v7, %v927_v34  ;;  %3749 = vpow2.f32 %v1866_v12 }
 0x36c   :  { %1878 = vadd.xlane.f32.xlu0 %v1877_v38 }
 0x36d   :  { %v4325_v43 = vpop.eup %3745  ;;  %v946_v24 = vrot.slane %v938_v35, %v4121_v37  ;;  %v953_v26 = vrot.slane %v939_v36, %v4121_v37 }
 0x36e   :  { %v1880_v46 = vsel %vm1819_vm2, %v4325_v43, 0.0 }
 0x36f   :  { %v970_v47 = vcombine.low %v946_v24, %v962_v45  ;;  %v971_v48 = vcombine.high %v946_v24, %v962_v45  ;;  %v986_v7 = vcombine.low %v953_v26, %v969_v23  ;;  %v987_v49 = vcombine.high %v953_v26, %v969_v23  ;;  %1881 = vadd.xlane.f32.xlu1 %v1880_v46 }
 0x371   :  { %v4333_v50 = vpop.eup %3747  ;;  %v978_v51 = vrot.slane %v970_v47, %v4124_v44  ;;  %v985_v52 = vrot.slane %v971_v48, %v4124_v44  ;;  %v994_v25 = vrot.slane %v986_v7, %v4124_v44  ;;  %v1001_v27 = vrot.slane %v987_v49, %v4124_v44 }
 0x372   :  { %v1883_v54 = vsel %vm1819_vm2, %v4333_v50, 0.0 }
 0x373   :  { %v1074_v55 = vcombine.low %v978_v51, %v985_v52  ;;  %v3247_v56 = vcombine.high %v978_v51, %v985_v52  ;;  %v1090_v39 = vcombine.low %v994_v25, %v1001_v27  ;;  %v3248_v40 = vcombine.high %v994_v25, %v1001_v27  ;;  %1884 = vadd.xlane.f32.xlu0 %v1883_v54 }
 0x375   :  { %v1081_v41 = vrot.slane %v1074_v55, %v4121_v37  ;;  %v1089_v42 = vrot.slane %v3247_v56, %v4121_v37  ;;  %v1097_v57 = vrot.slane %v1090_v39, %v4121_v37  ;;  %v1105_v58 = vrot.slane %v3248_v40, %v4121_v37  ;;  %v4356_v1 = vpop.eup %3749 }
 0x376   :  { %v1889_v17 = vsel %vm1819_vm2, %v4356_v1, 0.0 }
 0x377   :  { %v1106_v60 = vcombine.low %v1081_v41, %v1089_v42  ;;  %v1122_v61 = vcombine.low %v1097_v57, %v1105_v58  ;;  %v1107_v62 = vcombine.high %v1081_v41, %v1089_v42  ;;  %v1123_v63 = vcombine.high %v1097_v57, %v1105_v58 }
 0x379   :  { %v1114_v2 = vrot.slane %v1106_v60, %v4124_v44  ;;  %v1130_v16 = vrot.slane %v1122_v61, %v4124_v44  ;;  %v1121_v3 = vrot.slane %v1107_v62, %v4124_v44  ;;  %v1137_v4 = vrot.slane %v1123_v63, %v4124_v44 }
 0x37b   :  { %v1138_v6 = vcombine.low %v1114_v2, %v1130_v16  ;;  %v1139_v8 = vcombine.high %v1114_v2, %v1130_v16  ;;  %v1140_v9 = vcombine.low %v1121_v3, %v1137_v4  ;;  %v1141_v10 = vcombine.high %v1121_v3, %v1137_v4 }
 0x37d   :  { %3467 = vmatpush3.msra.mxu1 %v1138_v6  ;;  %3472 = vmatpush3.msra.mxu0 %v1139_v8 }
 0x37e   :  { %3476 = vmatprep.subr.mxu1 %v3928_v0  ;;  %3481 = vmatprep.subr.mxu0 %v3928_v0 }
 0x380   :  { %928 = vrot.lane.b32.xlu1 %v4244_v28, %s3931_s2 }
 0x389   :  { %922 = vrot.lane.b32.xlu0 %v4244_v28, %s3930_s21 }
 0x3a4   :  { %1890 = vadd.xlane.f32.xlu1 %v1889_v17 }
 0x3b5   :  { %934 = vrot.lane.b32.xlu1 %v4244_v28, %s3929_s20 }
 0x3ec   :  { %v1870_v19 = vpop.xlane.xlu1 %1869 }
 0x3ed   :  { %3751 = vrcp.f32 %v1870_v19 }
 0x3f0   :  { %v1873_v20 = vpop.xlane.xlu0 %1872 }
 0x3f1   :  { %3753 = vrcp.f32 %v1873_v20 }
 0x3f4   :  { %v1876_v22 = vpop.xlane.xlu1 %1875 }
 0x3f5   :  { %3755 = vrcp.f32 %v1876_v22  ;;  %v1888_v30 = vpop.xlane.xlu0 %1887 }
 0x3f7   :  { %v3752_v32 = vpop.eup %3751 }
 0x3f8   :  { %v1900_v53 = vmul.f32 %v3752_v32, %v4303_v5 }
 0x3f9   :  { %v1879_v21 = vpop.xlane.xlu0 %1878 }
 0x3fa   :  { %3469 = vmatmul.mubr.msk.f32.vlgmr.msra.gmra.mrb[4].mxu1 %vm1819_vm2, %v1900_v53  ;;  %3757 = vrcp.f32 %v1879_v21 }
 0x3fb   :  { %v3754_v33 = vpop.eup %3753  ;;  %3477 = vmatpush3.msra.mxu1 %v1140_v9  ;;  %3478 = vmatprep.mubr.msk.f32.mxu1 %vm3932_vm0, %v3928_v0 }
 0x3fc   :  { %v1901_v34 = vmul.f32 %v3754_v33, %v4307_v59  ;;  %3486 = vmatprep.subr.mxu1 %v3928_v0  ;;  %v1882_v38 = vpop.xlane.xlu1 %1881 }
 0x3fd   :  { %3759 = vrcp.f32 %v1882_v38 }
 0x3fe   :  { %3474 = vmatmul.mubr.msk.f32.vlgmr.msra.gmra.mrb[18].mxu0 %vm1819_vm2, %v1901_v34 }
 0x3ff   :  { %v3756_v35 = vpop.eup %3755  ;;  %3482 = vmatpush3.msra.mxu0 %v1141_v10  ;;  %3483 = vmatprep.mubr.msk.f32.mxu0 %vm3932_vm0, %v3928_v0 }
 0x400   :  { %v1902_v5 = vmul.f32 %v3756_v35, %v4311_v18  ;;  %3491 = vmatprep.subr.mxu0 %v3928_v0  ;;  %v929_v45 = vpop.permute.xlu1 %928  ;;  %v1885_v23 = vpop.xlane.xlu0 %1884  ;;  %v2798_v35 = vld [vmem:[#allocation7 + $0x10] sm:$0xff] }
 0x401   :  { %v1006_v18 = vcombine.low %v4244_v28, %v929_v45  ;;  %v1007_v26 = vcombine.high %v4244_v28, %v929_v45  ;;  %3761 = vrcp.f32 %v1885_v23  ;;  %v2802_v45 = vld [vmem:[#allocation7 + $0x30] sm:$0xff]  ;;  %v2803_v23 = vld [vmem:[#allocation7 + $0x38] sm:$0xff] }
 0x402   :  { %3479 = vmatmul.mubr.msk.f32.vlgmr.msra.gmra.mrb[6].mxu1 %vm1819_vm2, %v1902_v5  ;;  %3763 = vrcp.f32 %v1888_v30  ;;  %v2799_v5 = vld [vmem:[#allocation7 + $0x18] sm:$0xff] }
 0x403   :  { %3488 = vmatprep.mubr.msk.f32.mxu1 %vm3932_vm0, %v3928_v0  ;;  %v1021_v49 = vrot.slane %v1007_v26, %v4121_v37  ;;  %v2805_v26 = vld [vmem:[#allocation7 + $0x48] sm:$0xff] }
 0x404   :  { %v3758_v36 = vpop.eup %3757  ;;  %v923_v46 = vpop.permute.xlu0 %922 }
 0x405   :  { %v1903_v59 = vmul.f32 %v3758_v36, %v4319_v31  ;;  %v1014_v31 = vrot.slane %v1006_v18, %v4121_v37  ;;  %v2800_v36 = vld [vmem:[#allocation7 + $0x20] sm:$0xff] }
 0x406   :  { %v2804_v18 = vld [vmem:[#allocation7 + $0x40] sm:$0xff] }
 0x407   :  { %3484 = vmatmul.mubr.msk.f32.vlgmr.msra.gmra.mrb[20].mxu0 %vm1819_vm2, %v1903_v59  ;;  %v3760_v2 = vpop.eup %3759  ;;  %v2801_v59 = vld [vmem:[#allocation7 + $0x28] sm:$0xff] }
 0x408   :  { %3493 = vmatprep.mubr.msk.f32.mxu0 %vm3932_vm0, %v3928_v0  ;;  %v1904_v30 = vmul.f32 %v3760_v2, %v4325_v43  ;;  %v2796_v43 = vld [vmem:[#allocation7] sm:$0xff]  ;;  %v3613_v38 = vpack.c.bf16 %v2801_v59, %v2800_v36 }
 0x40b   :  { %v3762_v8 = vpop.eup %3761 }
 0x40c   :  { %v3764_v11 = vpop.eup %3763  ;;  %v1905_v32 = vmul.f32 %v3762_v8, %v4333_v50  ;;  %v2797_v50 = vld [vmem:[#allocation7 + $0x8] sm:$0xff] }
 0x40d   :  { %v1906_v33 = vmul.f32 %v3764_v11, %v4315_v29  ;;  %v3605_v29 = vpack.c.bf16 %v2797_v50, %v2796_v43 }
 0x431   :  { %v1891_v24 = vpop.xlane.xlu1 %1890 }
 0x432   :  { %3765 = vrcp.f32 %v1891_v24  ;;  %v3617_v24 = vpack.c.bf16 %v2803_v23, %v2802_v45 }
 0x435   :  { %v935_v47 = vpop.permute.xlu1 %934 }
 0x436   :  { %v1022_v48 = vcombine.low %v923_v46, %v935_v47  ;;  %v1023_v7 = vcombine.high %v923_v46, %v935_v47  ;;  %v3621_v46 = vpack.c.bf16 %v2805_v26, %v2804_v18  ;;  %v2806_v47 = vld [vmem:[#allocation7 + $0x50] sm:$0xff] }
 0x438   :  { %v1030_v51 = vrot.slane %v1022_v48, %v4121_v37  ;;  %v1037_v52 = vrot.slane %v1023_v7, %v4121_v37  ;;  %v2807_v48 = vld [vmem:[#allocation7 + $0x58] sm:$0xff] }
 0x439   :  { %v3625_v7 = vpack.c.bf16 %v2807_v48, %v2806_v47 }
 0x43a   :  { %v1038_v25 = vcombine.low %v1014_v31, %v1030_v51  ;;  %v1039_v27 = vcombine.high %v1014_v31, %v1030_v51  ;;  %v1054_v54 = vcombine.low %v1021_v49, %v1037_v52  ;;  %v1055_v55 = vcombine.high %v1021_v49, %v1037_v52 }
 0x43c   :  { %v1046_v28 = vrot.slane %v1038_v25, %v4124_v44  ;;  %v1053_v56 = vrot.slane %v1039_v27, %v4124_v44  ;;  %v1062_v39 = vrot.slane %v1054_v54, %v4124_v44  ;;  %v1069_v40 = vrot.slane %v1055_v55, %v4124_v44  ;;  %v3766_v22 = vpop.eup %3765 }
 0x43d   :  { %v1907_v34 = vmul.f32 %v3766_v22, %v4356_v1  ;;  %v3609_v1 = vpack.c.bf16 %v2799_v5, %v2798_v35 }
 0x43e   :  { %v1142_v41 = vcombine.low %v1046_v28, %v1053_v56  ;;  %v3249_v42 = vcombine.high %v1046_v28, %v1053_v56  ;;  %v1158_v57 = vcombine.low %v1062_v39, %v1069_v40  ;;  %v3250_v58 = vcombine.high %v1062_v39, %v1069_v40 }
 0x440   :  { %v1149_v60 = vrot.slane %v1142_v41, %v4121_v37  ;;  %v1157_v61 = vrot.slane %v3249_v42, %v4121_v37  ;;  %v1165_v62 = vrot.slane %v1158_v57, %v4121_v37  ;;  %v1173_v63 = vrot.slane %v3250_v58, %v4121_v37 }
 0x442   :  { %v1174_v16 = vcombine.low %v1149_v60, %v1157_v61  ;;  %v1190_v3 = vcombine.low %v1165_v62, %v1173_v63  ;;  %v1175_v4 = vcombine.high %v1149_v60, %v1157_v61  ;;  %v1191_v6 = vcombine.high %v1165_v62, %v1173_v63 }
 0x444   :  { %v1182_v9 = vrot.slane %v1174_v16, %v4124_v44  ;;  %v1198_v10 = vrot.slane %v1190_v3, %v4124_v44  ;;  %v1189_v12 = vrot.slane %v1175_v4, %v4124_v44  ;;  %v1205_v17 = vrot.slane %v1191_v6, %v4124_v44 }
 0x446   :  { %v1206_v19 = vcombine.low %v1182_v9, %v1198_v10  ;;  %v1207_v20 = vcombine.high %v1182_v9, %v1198_v10  ;;  %v1208_v53 = vcombine.low %v1189_v12, %v1205_v17  ;;  %v1209_v21 = vcombine.high %v1189_v12, %v1205_v17 }
 0x448   :  { %3487 = vmatpush3.msra.mxu1 %v1206_v19  ;;  %3492 = vmatpush3.msra.mxu0 %v1207_v20 }
 0x449   :  { %3489 = vmatmul.mubr.msk.f32.vlgmr.msra.gmra.mrb[8].mxu1 %vm1819_vm2, %v1904_v30  ;;  %3494 = vmatmul.mubr.msk.f32.vlgmr.msra.gmra.mrb[22].mxu0 %vm1819_vm2, %v1905_v32 }
 0x44a   :  { %3496 = vmatprep.subr.mxu1 %v3928_v0  ;;  %3501 = vmatprep.subr.mxu0 %v3928_v0 }
 0x44b   :  { %3497 = vmatpush3.msra.mxu1 %v1208_v53  ;;  %3502 = vmatpush3.msra.mxu0 %v1209_v21 }
 0x44c   :  { %3498 = vmatprep.mubr.msk.f32.mxu1 %vm3932_vm0, %v3928_v0  ;;  %3503 = vmatprep.mubr.msk.f32.mxu0 %vm3932_vm0, %v3928_v0 }
 0x44d   :  { %3499 = vmatmul.mubr.msk.f32.vlgmr.msra.gmra.mrb[10].mxu1 %vm1819_vm2, %v1906_v33  ;;  %3504 = vmatmul.mubr.msk.f32.vlgmr.msra.gmra.mrb[24].mxu0 %vm1819_vm2, %v1907_v34 }
 0x44e   :  { %3045 = vmatprep.mubr.f32.mxu0 %v3928_v0  ;;  %3606 = vmatprep.subr.bf16.mxu1 %v3605_v29 }
 0x44f   :  { %3608 = vmatpush3.bf16.msra.mxu1 %v3605_v29 }
 0x450   :  { %3610 = vmatprep.subr.bf16.mxu1 %v3609_v1 }
 0x453   :  { %3612 = vmatpush3.bf16.msra.mxu1 %v3609_v1 }
 0x454   :  { %3614 = vmatprep.subr.bf16.mxu1 %v3613_v38 }
 0x457   :  { %3616 = vmatpush3.bf16.msra.mxu1 %v3613_v38 }
 0x458   :  { %3618 = vmatprep.subr.bf16.mxu1 %v3617_v24 }
 0x45b   :  { %3620 = vmatpush3.bf16.msra.mxu1 %v3617_v24 }
 0x45c   :  { %3622 = vmatprep.subr.bf16.mxu1 %v3621_v46 }
 0x45f   :  { %3624 = vmatpush3.bf16.msra.mxu1 %v3621_v46 }
 0x460   :  { %3626 = vmatprep.subr.bf16.mxu1 %v3625_v7 }
 0x463   :  { %3628 = vmatpush3.bf16.msra.mxu1 %v3625_v7 }
 0x4cd   :  { %v1977_v31 = vpop.f32.mrb[4].mxu1 }
 0x4ce   :  { %v3470_v49 = vpop.f32.mrb[5].mxu1 }
 0x4d1   :  { %v2050_v51 = vpop.f32.mrb[18].mxu0 }
 0x4d2   :  { %v3475_v52 = vpop.f32.mrb[19].mxu0 }
 0x4d5   :  { %v2123_v25 = vpop.f32.mrb[6].mxu1 }
 0x4d6   :  { %v2492_v27 = vcombine.low %v1977_v31, %v2123_v25  ;;  %v2493_v54 = vcombine.high %v1977_v31, %v2123_v25  ;;  %v3480_v55 = vpop.f32.mrb[7].mxu1 }
 0x4d8   :  { %v2500_v41 = vrot.slane %v2492_v27, %v4121_v37  ;;  %v2507_v42 = vrot.slane %v2493_v54, %v4121_v37 }
 0x4da   :  { %v2196_v28 = vpop.f32.mrb[20].mxu0 }
 0x4db   :  { %v2508_v56 = vcombine.low %v2050_v51, %v2196_v28  ;;  %v2509_v39 = vcombine.high %v2050_v51, %v2196_v28  ;;  %v3485_v40 = vpop.f32.mrb[21].mxu0 }
 0x4dd   :  { %v2516_v57 = vrot.slane %v2508_v56, %v4121_v37  ;;  %v2523_v58 = vrot.slane %v2509_v39, %v4121_v37 }
 0x4df   :  { %v2524_v60 = vcombine.low %v2500_v41, %v2516_v57  ;;  %v2525_v61 = vcombine.high %v2500_v41, %v2516_v57  ;;  %v2540_v62 = vcombine.low %v2507_v42, %v2523_v58  ;;  %v2541_v63 = vcombine.high %v2507_v42, %v2523_v58  ;;  %v2808_v57 = vld [vmem:[#allocation7 + $0x60] sm:$0xff]  ;;  %v2809_v58 = vld [vmem:[#allocation7 + $0x68] sm:$0xff] }
 0x4e1   :  { %v2532_v2 = vrot.slane %v2524_v60, %v4124_v44  ;;  %v2539_v16 = vrot.slane %v2525_v61, %v4124_v44  ;;  %v2548_v3 = vrot.slane %v2540_v62, %v4124_v44  ;;  %v2555_v4 = vrot.slane %v2541_v63, %v4124_v44 }
 0x4e3   :  { %v2628_v6 = vcombine.low %v2532_v2, %v2539_v16  ;;  %v3275_v8 = vcombine.high %v2532_v2, %v2539_v16  ;;  %v2644_v9 = vcombine.low %v2548_v3, %v2555_v4  ;;  %v3276_v10 = vcombine.high %v2548_v3, %v2555_v4  ;;  %v2810_v16 = vld [vmem:[#allocation7 + $0x70] sm:$0xff]  ;;  %v2811_v3 = vld [vmem:[#allocation7 + $0x78] sm:$0xff] }
 0x4e4   :  { %v3629_v2 = vpack.c.bf16 %v2809_v58, %v2808_v57  ;;  %v2946_v57 = vld [vmem:[#allocation8 + $0x48] sm:$0xff]  ;;  %v2948_v58 = vld [vmem:[#allocation8 + $0x58] sm:$0xff] }
 0x4e5   :  { %v2635_v11 = vrot.slane %v2628_v6, %v4121_v37  ;;  %v2643_v12 = vrot.slane %v3275_v8, %v4121_v37  ;;  %v2651_v17 = vrot.slane %v2644_v9, %v4121_v37  ;;  %v2659_v19 = vrot.slane %v3276_v10, %v4121_v37 }
 0x4e6   :  { %3630 = vmatprep.subr.bf16.mxu1 %v3629_v2  ;;  %v3633_v10 = vpack.c.bf16 %v2811_v3, %v2810_v16 }
 0x4e7   :  { %v2661_v20 = vcombine.high %v2635_v11, %v2643_v12  ;;  %v2677_v22 = vcombine.high %v2651_v17, %v2659_v19  ;;  %v2660_v30 = vcombine.low %v2635_v11, %v2643_v12  ;;  %v2676_v32 = vcombine.low %v2651_v17, %v2659_v19  ;;  %3632 = vmatpush3.bf16.msra.mxu1 %v3629_v2 }
 0x4e8   :  { %3634 = vmatprep.subr.bf16.mxu1 %v3633_v10 }
 0x4e9   :  { %v4426_v53 = vrot.slane %v2661_v20, %v4124_v44  ;;  %v4429_v21 = vrot.slane %v2677_v22, %v4124_v44  ;;  %v4432_v33 = vrot.slane %v2660_v30, %v4124_v44  ;;  %v4435_v34 = vrot.slane %v2676_v32, %v4124_v44 }
 0x4eb   :  { %v2694_v43 = vcombine.low %v4426_v53, %v4429_v21  ;;  %v2692_v50 = vcombine.low %v4432_v33, %v4435_v34  ;;  %v2693_v35 = vcombine.high %v4432_v33, %v4435_v34  ;;  %v2695_v29 = vcombine.high %v4426_v53, %v4429_v21  ;;  %3636 = vmatpush3.bf16.msra.mxu1 %v3633_v10 }
 0x51c   :  { %v2269_v5 = vpop.f32.mrb[8].mxu1  ;;  %v2342_v1 = vpop.f32.mrb[22].mxu0 }
 0x51d   :  { %v3490_v36 = vpop.f32.mrb[9].mxu1  ;;  %v3495_v59 = vpop.f32.mrb[23].mxu0 }
 0x520   :  { %v2415_v38 = vpop.f32.mrb[10].mxu1  ;;  %v2488_v45 = vpop.f32.mrb[24].mxu0 }
 0x521   :  { %v2560_v23 = vcombine.low %v2269_v5, %v2415_v38  ;;  %v2561_v24 = vcombine.high %v2269_v5, %v2415_v38  ;;  %v2576_v18 = vcombine.low %v2342_v1, %v2488_v45  ;;  %v2577_v26 = vcombine.high %v2342_v1, %v2488_v45  ;;  %v3500_v46 = vpop.f32.mrb[11].mxu1  ;;  %v3505_v47 = vpop.f32.mrb[25].mxu0 }
 0x522   :  { %v3279_v47 = vld [vmem:[%s4524_s4] ss:$0 sm:$0xff] }
 0x523   :  { %v2568_v48 = vrot.slane %v2560_v23, %v4121_v37  ;;  %v2575_v7 = vrot.slane %v2561_v24, %v4121_v37  ;;  %v2584_v31 = vrot.slane %v2576_v18, %v4121_v37  ;;  %v2591_v49 = vrot.slane %v2577_v26, %v4121_v37 }
 0x525   :  { %v2592_v51 = vcombine.low %v2568_v48, %v2584_v31  ;;  %v2593_v52 = vcombine.high %v2568_v48, %v2584_v31  ;;  %v2608_v25 = vcombine.low %v2575_v7, %v2591_v49  ;;  %v2609_v27 = vcombine.high %v2575_v7, %v2591_v49  ;;  %v3776_v49 = vld [vmem:[#allocation2] sm:$0xff] }
 0x527   :  { %v2600_v54 = vrot.slane %v2592_v51, %v4124_v44  ;;  %v2607_v55 = vrot.slane %v2593_v52, %v4124_v44  ;;  %v2616_v28 = vrot.slane %v2608_v25, %v4124_v44  ;;  %v2623_v56 = vrot.slane %v2609_v27, %v4124_v44  ;;  %v2938_v52 = vld [vmem:[#allocation8 + $0x8] sm:$0xff]  ;;  %v2940_v25 = vld [vmem:[#allocation8 + $0x18] sm:$0xff]  ;;  %v2937_v27 = vld [vmem:[#allocation8] sm:$0xff] }
 0x529   :  { %v2696_v39 = vcombine.low %v2600_v54, %v2607_v55  ;;  %v3277_v40 = vcombine.high %v2600_v54, %v2607_v55  ;;  %v2712_v41 = vcombine.low %v2616_v28, %v2623_v56  ;;  %v3278_v42 = vcombine.high %v2616_v28, %v2623_v56  ;;  %v2939_v55 = vld [vmem:[#allocation8 + $0x10] sm:$0xff]  ;;  %v2942_v28 = vld [vmem:[#allocation8 + $0x28] sm:$0xff]  ;;  %v2944_v56 = vld [vmem:[#allocation8 + $0x38] sm:$0xff] }
 0x52a   :  { %v3637_v54 = vpack.c.bf16 %v2940_v25, %v2938_v52  ;;  %v3063_v52 = vld [vmem:[#allocation10 + $0x8] sm:$0xff]  ;;  %v3080_v25 = vld [vmem:[#allocation10 + $0x90] sm:$0xff] }
 0x52b   :  { %v2703_v60 = vrot.slane %v2696_v39, %v4121_v37  ;;  %v2711_v61 = vrot.slane %v3277_v40, %v4121_v37  ;;  %v2719_v62 = vrot.slane %v2712_v41, %v4121_v37  ;;  %v2727_v63 = vrot.slane %v3278_v42, %v4121_v37  ;;  %v2941_v41 = vld [vmem:[#allocation8 + $0x20] sm:$0xff]  ;;  %v2943_v42 = vld [vmem:[#allocation8 + $0x30] sm:$0xff] }
 0x52c   :  { %v3639_v39 = vpack.c.bf16 %v2939_v55, %v2937_v27  ;;  %v3641_v40 = vpack.c.bf16 %v2944_v56, %v2942_v28  ;;  %3638 = vmatprep.subr.bf16.mxu0 %v3637_v54  ;;  %v3081_v27 = vld [vmem:[#allocation10 + $0x98] sm:$0xff]  ;;  %v3064_v28 = vld [vmem:[#allocation10 + $0x10] sm:$0xff] }
 0x52d   :  { %v2729_v4 = vcombine.high %v2703_v60, %v2711_v61  ;;  %v2745_v6 = vcombine.high %v2719_v62, %v2727_v63  ;;  %v2728_v8 = vcombine.low %v2703_v60, %v2711_v61  ;;  %v2744_v9 = vcombine.low %v2719_v62, %v2727_v63  ;;  %v2945_v62 = vld [vmem:[#allocation8 + $0x40] sm:$0xff]  ;;  %v2947_v63 = vld [vmem:[#allocation8 + $0x50] sm:$0xff]  ;;  %v3065_v56 = vld [vmem:[#allocation10 + $0x18] sm:$0xff] }
 0x52e   :  { %3640 = vmatpush1.bf16.msra.mxu0 %v3639_v39  ;;  %v3643_v60 = vpack.c.bf16 %v2943_v42, %v2941_v41  ;;  %v3645_v61 = vpack.c.bf16 %v2948_v58, %v2946_v57  ;;  %v3647_v2 = vpack.c.bf16 %v2947_v63, %v2945_v62  ;;  %v3673_v55 = vpack.c.bf16 %v3081_v27, %v3080_v25  ;;  %v3082_v39 = vld [vmem:[#allocation10 + $0xa0] sm:$0xff]  ;;  %v3067_v58 = vld [vmem:[#allocation10 + $0x28] sm:$0xff] }
 0x52f   :  { %v2743_v11 = vrot.slane %v2729_v4, %v4124_v44  ;;  %v2759_v12 = vrot.slane %v2745_v6, %v4124_v44  ;;  %v2736_v17 = vrot.slane %v2728_v8, %v4124_v44  ;;  %v2752_v19 = vrot.slane %v2744_v9, %v4124_v44  ;;  %3642 = vmatprep.subr.bf16.mxu0 %v3641_v40  ;;  %v3083_v40 = vld [vmem:[#allocation10 + $0xa8] sm:$0xff]  ;;  %v3066_v57 = vld [vmem:[#allocation10 + $0x20] sm:$0xff] }
 0x530   :  { %v3675_v41 = vpack.c.bf16 %v3065_v56, %v3064_v28  ;;  %v3677_v42 = vpack.c.bf16 %v3083_v40, %v3082_v39  ;;  %v3679_v62 = vpack.c.bf16 %v3067_v58, %v3066_v57 }
 0x531   :  { %v2762_v37 = vcombine.low %v2743_v11, %v2759_v12  ;;  %v2761_v20 = vcombine.high %v2736_v17, %v2752_v19  ;;  %v2760_v22 = vcombine.low %v2736_v17, %v2752_v19  ;;  %v2763_v30 = vcombine.high %v2743_v11, %v2759_v12  ;;  %v2950_v12 = vld [vmem:[#allocation8 + $0x68] sm:$0xff]  ;;  %v2952_v17 = vld [vmem:[#allocation8 + $0x78] sm:$0xff] }
 0x532   :  { %3644 = vmatpush1.bf16.msra.mxu0 %v3643_v60  ;;  %v3649_v19 = vpack.c.bf16 %v2952_v17, %v2950_v12  ;;  %v3084_v60 = vld [vmem:[#allocation10 + $0xb0] sm:$0xff]  ;;  %v3071_v12 = vld [vmem:[#allocation10 + $0x48] sm:$0xff] }
 0x533   :  { %v3725_v32 = vpack.i.bf16 %v2762_v37, %v2694_v43  ;;  %v3720_v53 = vpack.i.bf16 %v2761_v20, %v2693_v35  ;;  %v3730_v21 = vpack.i.bf16 %v2763_v30, %v2695_v29  ;;  %3646 = vmatprep.subr.bf16.mxu0 %v3645_v61  ;;  %v2949_v37 = vld [vmem:[#allocation8 + $0x60] sm:$0xff]  ;;  %v2951_v20 = vld [vmem:[#allocation8 + $0x70] sm:$0xff]  ;;  %v3085_v61 = vld [vmem:[#allocation10 + $0xb8] sm:$0xff] }
 0x534   :  { %v3651_v30 = vpack.c.bf16 %v2951_v20, %v2949_v37  ;;  %v3681_v63 = vpack.c.bf16 %v3085_v61, %v3084_v60  ;;  %v3088_v17 = vld [vmem:[#allocation10 + $0xd0] sm:$0xff] }
 0x535   :  { %3726 = vrot.lane.b32.xlu1 %v3725_v32, %s3931_s2  ;;  %3721 = vrot.lane.b32.xlu0 %v3720_v53, %s3929_s20  ;;  %v2956_v32 = vld [vmem:[#allocation8 + $0x98] sm:$0xff]  ;;  %v2953_v53 = vld [vmem:[#allocation8 + $0x80] sm:$0xff] }
 0x536   :  { %3648 = vmatpush1.bf16.msra.mxu0 %v3647_v2  ;;  %v3068_v2 = vld [vmem:[#allocation10 + $0x30] sm:$0xff] }
 0x537   :  { %3650 = vmatprep.subr.bf16.mxu0 %v3649_v19  ;;  %v3089_v19 = vld [vmem:[#allocation10 + $0xd8] sm:$0xff] }
 0x538   :  { %v3689_v20 = vpack.c.bf16 %v3089_v19, %v3088_v17 }
 0x539   :  { %3731 = vrot.lane.b32.xlu0 %v3730_v21, %s3930_s21  ;;  %v2955_v21 = vld [vmem:[#allocation8 + $0x90] sm:$0xff] }
 0x53a   :  { %3652 = vmatpush1.bf16.msra.mxu0 %v3651_v30  ;;  %v3073_v30 = vld [vmem:[#allocation10 + $0x58] sm:$0xff] }
 0x5a7   :  { %v3727_v5 = vpop.permute.xlu1 %3726  ;;  %v3722_v1 = vpop.permute.xlu0 %3721 }
 0x5a8   :  { %v3724_v36 = vunpack.i.h.bf16 %v3722_v1  ;;  %v3723_v44 = vunpack.i.l.bf16 %v3722_v1  ;;  %v3729_v59 = vunpack.i.h.bf16 %v3727_v5  ;;  %v3728_v38 = vunpack.i.l.bf16 %v3727_v5  ;;  %v2958_v1 = vld [vmem:[#allocation8 + $0xa8] sm:$0xff] }
 0x5aa   :  { %v2789_v45 = vsel %vm1210_vm1, %v2760_v22, %v3724_v36  ;;  %v2788_v43 = vsel %vm1210_vm1, %v2692_v50, %v3723_v44  ;;  %v3775_v50 = vld [vmem:[#allocation2 + $0x8] sm:$0xff]  ;;  %v2954_v22 = vld [vmem:[#allocation8 + $0x88] sm:$0xff]  ;;  %v3655_v44 = vpack.c.bf16 %v2955_v21, %v2953_v53 }
 0x5ab   :  { %v3732_v35 = vpop.permute.xlu0 %3731  ;;  %v2791_v24 = vsel %vm2790_vm3, %v2788_v43, %v3728_v38  ;;  %v2792_v18 = vsel %vm2790_vm3, %v2789_v45, %v3729_v59  ;;  %v3653_v5 = vpack.c.bf16 %v2956_v32, %v2954_v22  ;;  %v2960_v36 = vld [vmem:[#allocation8 + $0xb8] sm:$0xff]  ;;  %v2957_v38 = vld [vmem:[#allocation8 + $0xa0] sm:$0xff]  ;;  %v2959_v45 = vld [vmem:[#allocation8 + $0xb0] sm:$0xff] }
 0x5ac   :  { %v3734_v29 = vunpack.i.h.bf16 %v3732_v35  ;;  %v3733_v23 = vunpack.i.l.bf16 %v3732_v35  ;;  %v3657_v59 = vpack.c.bf16 %v2960_v36, %v2958_v1  ;;  %v2962_v43 = vld [vmem:[#allocation8 + $0xc8] sm:$0xff]  ;;  %v2964_v35 = vld [vmem:[#allocation8 + $0xd8] sm:$0xff]  ;;  %v3072_v22 = vld [vmem:[#allocation10 + $0x50] sm:$0xff] }
 0x5ad   :  { %3654 = vmatprep.subr.bf16.mxu0 %v3653_v5  ;;  %v3090_v32 = vld [vmem:[#allocation10 + $0xe0] sm:$0xff]  ;;  %v3091_v53 = vld [vmem:[#allocation10 + $0xe8] sm:$0xff]  ;;  %v3691_v21 = vpack.c.bf16 %v3073_v30, %v3072_v22 }
 0x5ae   :  { %v2794_v26 = vsel %vm2793_vm4, %v2791_v24, %v3733_v23  ;;  %v2795_v46 = vsel %vm2793_vm4, %v2792_v18, %v3734_v29  ;;  %3656 = vmatpush1.bf16.msra.mxu0 %v3655_v44  ;;  %v3659_v29 = vpack.c.bf16 %v2959_v45, %v2957_v38  ;;  %v3661_v23 = vpack.c.bf16 %v2964_v35, %v2962_v43  ;;  %v2961_v24 = vld [vmem:[#allocation8 + $0xc0] sm:$0xff]  ;;  %v2963_v18 = vld [vmem:[#allocation8 + $0xd0] sm:$0xff] }
 0x5af   :  { %3538 = vmatprep.mubr.f32.mxu1 %v2794_v26  ;;  %3658 = vmatprep.subr.bf16.mxu0 %v3657_v59  ;;  %v2966_v26 = vld [vmem:[#allocation8 + $0xe8] sm:$0xff]  ;;  %v3693_v5 = vpack.c.bf16 %v3091_v53, %v3090_v32 }
 0x5b0   :  { %3539 = vmatmul.mubr.f32.vlgmr.msra.gmra.mrb[12].mxu1 %v2795_v46  ;;  %v2968_v46 = vld [vmem:[#allocation8 + $0xf8] sm:$0xff] }
 0x5b2   :  { %3660 = vmatpush1.bf16.msra.mxu0 %v3659_v29  ;;  %v3280_v29 = vld [vmem:[%s4525_s5] ss:$0 sm:$0xff] }
 0x5b3   :  { %3662 = vmatprep.subr.bf16.mxu0 %v3661_v23 }
 0x683   :  { %v3540_v48 = vpop.f32.mrb[12].mxu1 }
 0x684   :  { %v2891_v7 = vadd.f32 %v3540_v48, %v3279_v47  ;;  %v2885_v33 = vpop.f32.mrb[13].mxu1  ;;  %v3665_v48 = vpack.c.bf16 %v2968_v46, %v2966_v26 }
 0x685   :  { %v2886_v34 = vadd.f32 %v3279_v47, %v2885_v33  ;;  %v3663_v47 = vpack.c.bf16 %v2963_v18, %v2961_v24  ;;  %v2967_v33 = vld [vmem:[#allocation8 + $0xf0] sm:$0xff] }
 0x686   :  { %v2895_v31 = vadd.f32 %v3775_v50, %v2891_v7  ;;  %v2965_v7 = vld [vmem:[#allocation8 + $0xe0] sm:$0xff]  ;;  %v3281_v18 = vld [vmem:[%s4526_s6] ss:$0 sm:$0xff] }
 0x687   :  { %v2894_v51 = vadd.f32 %v3776_v49, %v2886_v34  ;;  %3664 = vmatpush1.bf16.msra.mxu0 %v3663_v47  ;;  %v3667_v34 = vpack.c.bf16 %v2967_v33, %v2965_v7  ;;  %v3078_v50 = vld [vmem:[#allocation10 + $0x80] sm:$0xff]  ;;  %v3075_v33 = vld [vmem:[#allocation10 + $0x68] sm:$0xff] }
 0x688   :  { %2900 = vadd.xlane.f32.xlu0 %v2895_v31  ;;  %3666 = vmatprep.subr.bf16.mxu0 %v3665_v48  ;;  %v3062_v49 = vld [vmem:[#allocation10] sm:$0xff] }
 0x689   :  { %2898 = vadd.xlane.f32.xlu1 %v2894_v51  ;;  %v3671_v54 = vpack.c.bf16 %v3063_v52, %v3062_v49  ;;  %v3074_v7 = vld [vmem:[#allocation10 + $0x60] sm:$0xff]  ;;  %v3077_v49 = vld [vmem:[#allocation10 + $0x78] sm:$0xff]  ;;  %v2969_v52 = vld [vmem:[%s4528_s8] sm:$0x3] }
 0x68a   :  { %v2978_v25 = vrot.slane %v2969_v52, %v171_v15 }
 0x68b   :  { %3668 = vmatpush1.bf16.msra.mxu0 %v3667_v34  ;;  %v3695_v34 = vpack.c.bf16 %v3075_v33, %v3074_v7 }
 0x715   :  { %v2901_v16 = vpop.xlane.xlu0 %2900 }
 0x716   :  { %v2904_v3 = vmul.f32 0.0078125, %v2901_v16  ;;  %v2899_v4 = vpop.xlane.xlu1 %2898  ;;  %v3069_v16 = vld [vmem:[#allocation10 + $0x38] sm:$0xff] }
 0x717   :  { %v2903_v6 = vmul.f32 0.0078125, %v2899_v4  ;;  %v3087_v4 = vld [vmem:[#allocation10 + $0xc8] sm:$0xff] }
 0x718   :  { %v4472_v8 = vsub.f32 %v2895_v31, %v2904_v3  ;;  %v3079_v31 = vld [vmem:[#allocation10 + $0x88] sm:$0xff]  ;;  %v3086_v3 = vld [vmem:[#allocation10 + $0xc0] sm:$0xff] }
 0x719   :  { %v4474_v9 = vsub.f32 %v2894_v51, %v2903_v6  ;;  %v3669_v51 = vpack.c.bf16 %v3079_v31, %v3078_v50  ;;  %v3683_v6 = vpack.c.bf16 %v3069_v16, %v3068_v2  ;;  %v3092_v50 = vld [vmem:[#allocation10 + $0xf0] sm:$0xff]  ;;  %v3093_v31 = vld [vmem:[#allocation10 + $0xf8] sm:$0xff] }
 0x71a   :  { %v2908_v10 = vmul.f32 %v4472_v8, %v4472_v8 }
 0x71b   :  { %v2907_v11 = vmul.f32 %v4474_v9, %v4474_v9  ;;  %3670 = vmatprep.subr.bf16.mxu1 %v3669_v51 }
 0x71c   :  { %2911 = vadd.xlane.f32.xlu1 %v2908_v10  ;;  %3672 = vmatpush3.bf16.msra.mxu1 %v3671_v54  ;;  %v3685_v10 = vpack.c.bf16 %v3087_v4, %v3086_v3 }
 0x71d   :  { %2909 = vadd.xlane.f32.xlu0 %v2907_v11  ;;  %3674 = vmatprep.subr.bf16.mxu1 %v3673_v55  ;;  %v3070_v11 = vld [vmem:[#allocation10 + $0x40] sm:$0xff] }
 0x71e   :  { %v3687_v37 = vpack.c.bf16 %v3071_v12, %v3070_v11 }
 0x720   :  { %3676 = vmatpush3.bf16.msra.mxu1 %v3675_v41 }
 0x721   :  { %3678 = vmatprep.subr.bf16.mxu1 %v3677_v42 }
 0x724   :  { %3680 = vmatpush3.bf16.msra.mxu1 %v3679_v62 }
 0x725   :  { %3682 = vmatprep.subr.bf16.mxu1 %v3681_v63 }
 0x728   :  { %3684 = vmatpush3.bf16.msra.mxu1 %v3683_v6 }
 0x729   :  { %3686 = vmatprep.subr.bf16.mxu1 %v3685_v10 }
 0x72c   :  { %3688 = vmatpush3.bf16.msra.mxu1 %v3687_v37 }
 0x72d   :  { %3690 = vmatprep.subr.bf16.mxu1 %v3689_v20 }
 0x730   :  { %3692 = vmatpush3.bf16.msra.mxu1 %v3691_v21 }
 0x731   :  { %3694 = vmatprep.subr.bf16.mxu1 %v3693_v5 }
 0x734   :  { %3696 = vmatpush3.bf16.msra.mxu1 %v3695_v34 }
 0x7a9   :  { %v2912_v1 = vpop.xlane.xlu1 %2911 }
 0x7aa   :  { %v2914_v36 = vmul.f32 0.0078125, %v2912_v1  ;;  %v2910_v44 = vpop.xlane.xlu0 %2909 }
 0x7ab   :  { %v2913_v59 = vmul.f32 0.0078125, %v2910_v44  ;;  %v3283_v44 = vld [vmem:[%s4531_s11] ss:$0 sm:$0xff] }
 0x7ac   :  { %v2916_v38 = vadd.f32 1e-05, %v2914_v36 }
 0x7ad   :  { %v2915_v45 = vadd.f32 1e-05, %v2913_v59 }
 0x7ae   :  { %3767 = vrsqrt.f32 %v2916_v38  ;;  %v3284_v38 = vld [vmem:[%s4532_s12] ss:$0 sm:$0xff] }
 0x7af   :  { %3769 = vrsqrt.f32 %v2915_v45 }
 0x7b8   :  { %v3768_v43 = vpop.eup %3767 }
 0x7b9   :  { %v3770_v35 = vpop.eup %3769  ;;  %v2920_v24 = vmul.f32 %v3768_v43, %v4472_v8  ;;  %v3076_v8 = vld [vmem:[#allocation10 + $0x70] sm:$0xff] }
 0x7ba   :  { %v2919_v23 = vmul.f32 %v3770_v35, %v4474_v9  ;;  %v3697_v9 = vpack.c.bf16 %v3093_v31, %v3092_v50  ;;  %v3699_v51 = vpack.c.bf16 %v3077_v49, %v3076_v8 }
 0x7bb   :  { %v2928_v47 = vmul.f32 %v3280_v29, %v2920_v24 }
 0x7bc   :  { %v2927_v26 = vmul.f32 %v3280_v29, %v2919_v23  ;;  %3698 = vmatprep.subr.bf16.mxu1 %v3697_v9 }
 0x7bd   :  { %v2936_v48 = vadd.f32 %v3281_v18, %v2928_v47  ;;  %3700 = vmatpush3.bf16.msra.mxu1 %v3699_v51 }
 0x7be   :  { %v2935_v46 = vadd.f32 %v3281_v18, %v2927_v26 }
 0x7c0   :  { %3046 = vmatmul.mubr.f32.vlgmr.msra.gmra.mrb[26].mxu0 %v2935_v46 }
 0x7c1   :  { %3051 = vmatprep.mubr.f32.mxu0 %v3928_v0  ;;  %v2974_v0 = vrot.slane %v2969_v52, %v167_v14 }
 0x7c4   :  { %3052 = vmatmul.mubr.f32.gmra.mrb[28].mxu0 %v2936_v48 }
 0x893   :  { %v3047_v27 = vpop.f32.mrb[26].mxu0 }
 0x894   :  { %v3048_v54 = vadd.f32 %v3047_v27, %v2974_v0  ;;  %v3049_v55 = vpop.f32.mrb[27].mxu0 }
 0x895   :  { %v3050_v28 = vadd.f32 %v3049_v55, %v2978_v25 }
 0x896   :  { %v3058_v40 = vmax.f32 %v3048_v54, 0.0 }
 0x897   :  { %v3059_v56 = vmax.f32 %v3050_v28, 0.0  ;;  %v3053_v39 = vpop.f32.mrb[28].mxu0 }
 0x898   :  { %v3054_v41 = vadd.f32 %v3053_v39, %v2974_v0  ;;  %v3055_v42 = vpop.f32.mrb[29].mxu0 }
 0x899   :  { %v3056_v57 = vadd.f32 %v3055_v42, %v2978_v25  ;;  %3165 = vmatprep.mubr.f32.mxu1 %v3059_v56 }
 0x89a   :  { %3166 = vmatmul.mubr.f32.vlgmr.msra.gmra.mrb[14].mxu1 %v3058_v40  ;;  %v3060_v60 = vmax.f32 %v3054_v41, 0.0 }
 0x89b   :  { %v3061_v58 = vmax.f32 %v3056_v57, 0.0 }
 0x89d   :  { %3170 = vmatprep.mubr.f32.mxu1 %v3061_v58 }
 0x89e   :  { %3171 = vmatmul.mubr.f32.gmra.mrb[16].mxu1 %v3060_v60 }
 0x96d   :  { %v3385_v14 = vpop.f32.mrb[14].mxu1 }
 0x96e   :  { %v3386_v15 = vpop.f32.mrb[15].mxu1 }
 0x96f   :  { %v3387_v61 = vadd.f32 %v3386_v15, %v3385_v14 }
 0x971   :  { %v3168_v62 = vadd.f32 %v3387_v61, %v3282_v13  ;;  %v3388_v63 = vpop.f32.mrb[16].mxu1 }
 0x972   :  { %v3389_v2 = vpop.f32.mrb[17].mxu1 }
 0x973   :  { %v3390_v16 = vadd.f32 %v3389_v2, %v3388_v63  ;;  %v3176_v3 = vadd.f32 %v3168_v62, %v2935_v46 }
 0x975   :  { %v3173_v4 = vadd.f32 %v3390_v16, %v3282_v13  ;;  %3180 = vadd.xlane.f32.xlu0 %v3176_v3 }
 0x977   :  { %v3177_v6 = vadd.f32 %v3173_v4, %v2936_v48 }
 0x979   :  { %3182 = vadd.xlane.f32.xlu1 %v3177_v6 }
 0xa02   :  { %v3181_v10 = vpop.xlane.xlu0 %3180 }
 0xa03   :  { %v3184_v11 = vmul.f32 0.0078125, %v3181_v10 }
 0xa05   :  { %v3186_v12 = vsub.f32 %v3176_v3, %v3184_v11 }
 0xa06   :  { %v3183_v17 = vpop.xlane.xlu1 %3182 }
 0xa07   :  { %v3185_v19 = vmul.f32 0.0078125, %v3183_v17  ;;  %v3188_v37 = vmul.f32 %v3186_v12, %v3186_v12 }
 0xa09   :  { %v3187_v20 = vsub.f32 %v3177_v6, %v3185_v19  ;;  %3190 = vadd.xlane.f32.xlu0 %v3188_v37 }
 0xa0b   :  { %v3189_v22 = vmul.f32 %v3187_v20, %v3187_v20 }
 0xa0d   :  { %3192 = vadd.xlane.f32.xlu1 %v3189_v22 }
 0xa96   :  { %v3191_v30 = vpop.xlane.xlu0 %3190 }
 0xa97   :  { %v3194_v32 = vmul.f32 0.0078125, %v3191_v30 }
 0xa99   :  { %v3196_v53 = vadd.f32 1e-05, %v3194_v32 }
 0xa9a   :  { %v3193_v21 = vpop.xlane.xlu1 %3192 }
 0xa9b   :  { %3771 = vrsqrt.f32 %v3196_v53  ;;  %v3195_v5 = vmul.f32 0.0078125, %v3193_v21 }
 0xa9d   :  { %v3197_v1 = vadd.f32 1e-05, %v3195_v5 }
 0xa9f   :  { %3773 = vrsqrt.f32 %v3197_v1 }
 0xaa5   :  { %v3772_v36 = vpop.eup %3771 }
 0xaa6   :  { %v3200_v59 = vmul.f32 %v3772_v36, %v3186_v12 }
 0xaa8   :  { %v3208_v45 = vmul.f32 %v3283_v44, %v3200_v59 }
 0xaa9   :  { %v3774_v43 = vpop.eup %3773 }
 0xaaa   :  { %v3201_v35 = vmul.f32 %v3774_v43, %v3187_v20  ;;  %v3216_v29 = vadd.f32 %v3284_v38, %v3208_v45 }
 0xaac   :  { %v3209_v23 = vmul.f32 %v3283_v44, %v3201_v35  ;;  %3218 = vst [vmem:[#allocation11] sm:$0xff] %v3216_v29 }
 0xaae   :  { %v3217_v24 = vadd.f32 %v3284_v38, %v3209_v23 }
 0xab0   :  { %3219 = vst [vmem:[#allocation11 + $0x8] sm:$0xff] %v3217_v24 }
 0xab1   :  { %3898 = shalt.err (!%p3895_p2)
}
 0xab2   :  { %s3899_s17 = scalar_lea.hbm %s4533_s13, 256 }
 0xab3   :  { %p3900_p3 = scmp.ne.s32.totalorder %s4533_s13, %s3899_s17  ;;  %p3903_p4 = scmp.lt.u32.totalorder %s3899_s17, %s4533_s13 }
 0xab5   :  { %p3905_p5 = pnand %p3903_p4, %p3900_p3 }
 0xab7   :  { %3908 = shalt.err (!%p3905_p5)
}
 0xab8   :  { %3231 = dma.vmem_to_hbm [thread:$0]  %s3226_s15, 256, %s4533_s13, [#allocation4], %s3924_s7, %s3924_s7, %s3925_s23  }
 0xab9   :  { %3915 = dma.done.wait [#allocation4], 256  }
 0xaba   :  { %3916 = vsyncadd [#allocation4], 4294967040 }
 0xabb   :  { %3235 = vsyncpa [#allocation3], 1 }
 0xabc   :  { %3236 = vsyncpa [#allocation6], 1 }
 0xabd   :  { %3237 = vsyncpa [#allocation9], 1 }
 0xabe   :  { %3238 = vsyncpa [#allocation4], 1 }

</bundles_post_ra>
